<compile_context>
chip_gen: v5e
topology: v5e:2x2
jax: 0.10.0
libtpu: 0.0.40
codegen_flags: <defaults>
</compile_context>

<pallas_src>
import jax
import jax.numpy as jnp
from jax import lax
from jax.experimental import pallas as pl
from jax.experimental.pallas import tpu as pltpu

_KSIZE, _STRIDE, _PAD = 3, 2, 1
_CHANNELS = [4, 32, 64, 64, 128, 128]     # conv5 -> 128 == self.num_channels
_C_PAD = 128                               # lane-dense channel padding
_GUARD = 8                                 # sublane-aligned guard rows; row 7 = left zero pad


# ----------------------------------------------------------------------------
# Fused backbone kernel: all conv layers for one batch element, on-chip.
# ----------------------------------------------------------------------------
def _fused_backbone_kernel(x_ref, w_ref, b_ref, o_ref, act_ref):
    """
    x_ref:   (1, L0, 128) bf16   channels-last input (channels zero-padded to 128)
    w_ref:   (num_layers, 3, 128, 128) bf16   per-tap weights, (Cin_pad, Cout_pad)
    b_ref:   (num_layers, 128) f32
    o_ref:   (1, L0 // 2**num_layers, 128) f32
    act_ref: (L0 + _GUARD, 128) f32   activation scratch with zero guard rows
    """
    num_layers = w_ref.shape[0]
    l_in = x_ref.shape[1]

    # Zero guard rows once (row _GUARD-1 is the k=3,p=1 left zero pad; the right
    # pad is never read when lengths are even), then stage the layer-0 input.
    act_ref[pl.ds(0, _GUARD), :] = jnp.zeros((_GUARD, _C_PAD), jnp.float32)
    act_ref[pl.ds(_GUARD, l_in), :] = x_ref[0].astype(jnp.float32)

    bias = b_ref[...]                        # (num_layers, 128) f32, resident
    acc = None
    for layer in range(num_layers):
        l_out = l_in // 2
        acc = bias[layer:layer + 1, :]       # (1, 128), broadcasts over rows
        for k in range(_KSIZE):
            # Strided tap view: output row o reads input row 2*o + (k-1),
            # i.e. scratch row 2*o + k + (_GUARD-1).  No gather matmul needed.
            # (Kept inside the unrolled tap loop to bound vreg pressure.)
            xk = act_ref[pl.ds(_GUARD - 1 + k, l_out, stride=_STRIDE), :]
            acc = acc + jnp.dot(xk.astype(jnp.bfloat16), w_ref[layer, k],
                                preferred_element_type=jnp.float32)
        if layer < num_layers - 1:           # ReLU between layers, conv5 raw
            acc = jnp.maximum(acc, 0.0)
            act_ref[pl.ds(_GUARD, l_out), :] = acc
        l_in = l_out

    o_ref[0] = acc                           # (L5, 128) f32, lane-dense store


def _resident_spec(shape, index_map):
    """Block-invariant operand (weights/bias): single-buffer when supported."""
    try:
        return pl.BlockSpec(shape, index_map, pipeline_mode=pl.Buffered(1))
    except (AttributeError, TypeError):
        return pl.BlockSpec(shape, index_map)


def backbone_forward_pallas(x_nlc, w_packed, b_packed):
    """x_nlc: (N, L0, 128) bf16; returns conv5 output as (N, L0/2^layers, 128) f32."""
    n, l0, c = x_nlc.shape
    num_layers = w_packed.shape[0]
    l_out = l0 // (2 ** num_layers)

    # Explicit VMEM budget: double-buffered input/output tiles + weights/bias
    # (worst case double-buffered) + the f32 activation scratch.
    vmem_bytes = (
        2 * l0 * c * 2              # input tiles, bf16, double-buffered
        + 2 * l_out * c * 4         # output tiles, f32, double-buffered
        + 2 * w_packed.size * 2     # weights, bf16
        + 2 * b_packed.size * 4     # bias, f32
        + (l0 + _GUARD) * c * 4     # activation scratch, f32
    )
    vmem_limit = int(min(max(2 * vmem_bytes, 4 * 1024 * 1024), 48 * 1024 * 1024))

    # TODO(synk): for long sequences add a halo-tiled sequence grid axis
    # (62-row receptive-field overlap) so VMEM stays bounded independent of L0
    # and both v7x TensorCores get work even at small batch.
    return pl.pallas_call(
        _fused_backbone_kernel,
        grid=(n,),
        in_specs=[
            pl.BlockSpec((1, l0, c), lambda b: (b, 0, 0)),
            # Constant index maps: weights/bias DMA'd once, resident across grid.
            _resident_spec(w_packed.shape, lambda b: (0, 0, 0, 0)),
            _resident_spec(b_packed.shape, lambda b: (0, 0)),
        ],
        out_specs=pl.BlockSpec((1, l_out, c), lambda b: (b, 0, 0)),
        out_shape=jax.ShapeDtypeStruct((n, l_out, c), jnp.float32),
        scratch_shapes=[pltpu.VMEM((l0 + _GUARD, c), jnp.float32)],
        compiler_params=pltpu.CompilerParams(
            dimension_semantics=("parallel",),
            vmem_limit_bytes=vmem_limit),
    )(x_nlc, w_packed, b_packed)


# ----------------------------------------------------------------------------
# Synthetic backbone params (conv1..conv5), deterministic init
# ----------------------------------------------------------------------------
def init_backbone_params(key):
    params = []
    for i in range(5):
        key, kw, kb = jax.random.split(key, 3)
        cin, cout = _CHANNELS[i], _CHANNELS[i + 1]
        fan_in = cin * _KSIZE
        w = jax.random.normal(kw, (cout, cin, _KSIZE), jnp.float32) / jnp.sqrt(fan_in)
        b = 0.01 * jax.random.normal(kb, (cout,), jnp.float32)
        params.append((w, b))
    return params


def pack_backbone_params(params):
    """One-time weight packing (hoisted OUT of the jitted forward).

    Returns (num_layers, K, Cin_pad, Cout_pad) bf16 weights and
    (num_layers, Cout_pad) f32 biases; padded rows/cols are zero so padded
    lanes stay exactly zero through every layer.
    """
    num_layers = len(params)
    w_packed = jnp.zeros((num_layers, _KSIZE, _C_PAD, _C_PAD), jnp.float32)
    b_packed = jnp.zeros((num_layers, _C_PAD), jnp.float32)
    for i, (w, b) in enumerate(params):
        cout_i, cin_i, _ = w.shape
        w_packed = w_packed.at[i, :, :cin_i, :cout_i].set(
            jnp.transpose(w, (2, 1, 0)))            # (K, Cin, Cout)
        b_packed = b_packed.at[i, :cout_i].set(b)
    return jnp.asarray(w_packed, jnp.bfloat16), b_packed


# ----------------------------------------------------------------------------
# MJ_CONV2_BASE.forward (single jitted graph, one Pallas custom-call)
# ----------------------------------------------------------------------------
@jax.jit
def mj_conv2_base_forward(tensors, mask, w_packed, b_packed):
    """tensors: (N, Cin, L) f32, mask: (N, L) bool (True = padded position)."""
    n, cin, l = tensors.shape
    num_layers = w_packed.shape[0]
    assert l % (2 ** num_layers) == 0, "sequence length must be 2^num_layers aligned"

    # Layout glue: channels-last, 128-lane channel pad, bf16 cast (halves the
    # input DMA stream; the MXU operands are bf16 anyway).
    # TODO(synk): DMA the unpadded (N, L, Cin) block and pad lanes in-kernel to
    # avoid streaming the zero lanes through HBM for very long sequences.
    x_nlc = jnp.pad(jnp.transpose(tensors, (0, 2, 1)),
                    ((0, 0), (0, 0), (0, _C_PAD - cin))).astype(jnp.bfloat16)

    feats = backbone_forward_pallas(x_nlc, w_packed, b_packed)   # (N, L5, 128)

    # x[:, :, None, :] -> (N, 128, 1, L5)
    x4 = jnp.transpose(feats, (0, 2, 1))[:, :, None, :]

    # F.interpolate(m[None].float(), size=L5, mode='nearest').to(bool)[0]
    # TODO(synk): mask nearest-interpolation is tiny integer index glue, kept
    # in plain JAX inside the same jitted graph.
    l5 = x4.shape[-1]
    src = (jnp.arange(l5) * l) // l5            # exact integer nearest indexing
    m_out = mask[:, src]                        # (N, L5) bool
    return {"0": (x4, m_out)}


# ----------------------------------------------------------------------------
# Plain-JAX f32 reference (for a numerical sanity check only)
# ----------------------------------------------------------------------------
def _reference_forward(tensors, params):
    x = tensors
    for i, (w, b) in enumerate(params):
        x = lax.conv_general_dilated(
            x, w, window_strides=(_STRIDE,), padding=[(_PAD, _PAD)],
            dimension_numbers=("NCH", "OIH", "NCH")) + b[None, :, None]
        if i < len(params) - 1:
            x = jnp.maximum(x, 0.0)
    return x[:, :, None, :]


if __name__ == "__main__":
    key = jax.random.PRNGKey(0)
    k_x, k_p = jax.random.split(key)

    # L=256 keeps the final output tile sublane-aligned (L5 = 8 rows).
    N, Cin, L = 2, 4, 256
    x = jax.random.normal(k_x, (N, Cin, L), jnp.float32)
    valid = jnp.array([256, 192])
    mask = jnp.arange(L)[None, :] >= valid[:, None]       # (N, L) bool

    params = init_backbone_params(k_p)
    w_packed, b_packed = pack_backbone_params(params)     # one-time, outside jit

    out = mj_conv2_base_forward(x, mask, w_packed, b_packed)
    feat, out_mask = out["0"]
    jax.block_until_ready(feat)
    jax.block_until_ready(out_mask)

    assert feat.shape == (N, 128, 1, L // 32), feat.shape   # 5 stride-2 convs
    assert feat.dtype == jnp.float32
    assert out_mask.shape == (N, L // 32)
    assert out_mask.dtype == jnp.bool_

    # Numerical sanity check vs. f32 reference (bf16 MXU inputs -> loose tol).
    ref = _reference_forward(x, params)
    assert bool(jnp.allclose(feat, ref, atol=5e-2, rtol=5e-2)), \
        float(jnp.max(jnp.abs(feat - ref)))

    print("KERNEL_OK")
</pallas_src>

<mosaic_0001>
module attributes {stable_mosaic.version = 11 : i64} {
  func.func @_fused_backbone_kernel(%arg0: i32, %arg1: memref<1x256x128xbf16, #tpu.memory_space<vmem>>, %arg2: memref<5x3x128x128xbf16, #tpu.memory_space<vmem>>, %arg3: memref<5x128xf32, #tpu.memory_space<vmem>>, %arg4: memref<1x8x128xf32, #tpu.memory_space<vmem>>, %arg5: memref<264x128xf32, #tpu.memory_space<vmem>>) attributes {dimension_semantics = [#tpu.dimension_semantics<parallel>], iteration_bounds = array<i64: 2>, scalar_prefetch = 0 : i64, scratch_operands = 1 : i64, tpu.core_type = #tpu.core_type<tc>, window_params = [{transform_indices = @transform_0, window_bounds = array<i64: 1, 256, 128>}, {pipeline_mode = #tpu.pipeline_mode<synchronous>, transform_indices = @transform_1, window_bounds = array<i64: 5, 3, 128, 128>}, {pipeline_mode = #tpu.pipeline_mode<synchronous>, transform_indices = @transform_2, window_bounds = array<i64: 5, 128>}, {transform_indices = @transform_3, window_bounds = array<i64: 1, 8, 128>}]} {
    %cst = arith.constant 0.000000e+00 : f32
    %0 = vector.broadcast %cst : f32 to vector<8x128xf32>
    %c0 = arith.constant 0 : index
    %c0_0 = arith.constant 0 : index
    %1 = vector.load %arg5[%c0, %c0_0] : memref<264x128xf32, #tpu.memory_space<vmem>>, vector<8x128xf32>
    tpu.vector_store %arg5[%c0, %c0_0], %0 {strides = array<i32>} : memref<264x128xf32, #tpu.memory_space<vmem>>, vector<8x128xf32>,
    %c0_1 = arith.constant 0 : index
    %c0_2 = arith.constant 0 : index
    %c0_3 = arith.constant 0 : index
    %2 = vector.load %arg1[%c0_1, %c0_2, %c0_3] : memref<1x256x128xbf16, #tpu.memory_space<vmem>>, vector<1x256x128xbf16>
    %3 = vector.shape_cast %2 : vector<1x256x128xbf16> to vector<256x128xbf16>
    %4 = arith.extf %3 : vector<256x128xbf16> to vector<256x128xf32>
    %c8 = arith.constant 8 : index
    %c0_4 = arith.constant 0 : index
    %5 = vector.load %arg5[%c8, %c0_4] : memref<264x128xf32, #tpu.memory_space<vmem>>, vector<256x128xf32>
    tpu.vector_store %arg5[%c8, %c0_4], %4 {strides = array<i32>} : memref<264x128xf32, #tpu.memory_space<vmem>>, vector<256x128xf32>,
    %c0_5 = arith.constant 0 : index
    %c0_6 = arith.constant 0 : index
    %6 = vector.load %arg3[%c0_5, %c0_6] : memref<5x128xf32, #tpu.memory_space<vmem>>, vector<5x128xf32>
    %7 = vector.extract_strided_slice %6 {offsets = [0, 0], sizes = [1, 128], strides = [1, 1]} : vector<5x128xf32> to vector<1x128xf32>
    %c7 = arith.constant 7 : index
    %c0_7 = arith.constant 0 : index
    %8 = tpu.strided_load %arg5[%c7, %c0_7] {strides = array<i32: 2, 1>} : memref<264x128xf32, #tpu.memory_space<vmem>>, vector<128x128xf32>
    %9 = arith.truncf %8 : vector<128x128xf32> to vector<128x128xbf16>
    %c0_8 = arith.constant 0 : index
    %c0_9 = arith.constant 0 : index
    %c0_10 = arith.constant 0 : index
    %c0_11 = arith.constant 0 : index
    %10 = vector.load %arg2[%c0_8, %c0_9, %c0_10, %c0_11] : memref<5x3x128x128xbf16, #tpu.memory_space<vmem>>, vector<1x1x128x128xbf16>
    %11 = vector.shape_cast %10 : vector<1x1x128x128xbf16> to vector<128x128xbf16>
    %cst_12 = arith.constant dense<0.000000e+00> : vector<128x128xf32>
    %12 = tpu.matmul %9, %11, %cst_12 {dimension_numbers = #tpu.dot_dimension_numbers<[1], [0], [0], [1], [0, 0, 1, 1], [], []>} : vector<128x128xbf16>, vector<128x128xbf16>, vector<128x128xf32> -> vector<128x128xf32>
    %13 = vector.broadcast %7 : vector<1x128xf32> to vector<128x128xf32>
    %14 = arith.addf %13, %12 : vector<128x128xf32>
    %c8_13 = arith.constant 8 : index
    %c0_14 = arith.constant 0 : index
    %15 = tpu.strided_load %arg5[%c8_13, %c0_14] {strides = array<i32: 2, 1>} : memref<264x128xf32, #tpu.memory_space<vmem>>, vector<128x128xf32>
    %16 = arith.truncf %15 : vector<128x128xf32> to vector<128x128xbf16>
    %c0_15 = arith.constant 0 : index
    %c1 = arith.constant 1 : index
    %c0_16 = arith.constant 0 : index
    %c0_17 = arith.constant 0 : index
    %17 = vector.load %arg2[%c0_15, %c1, %c0_16, %c0_17] : memref<5x3x128x128xbf16, #tpu.memory_space<vmem>>, vector<1x1x128x128xbf16>
    %18 = vector.shape_cast %17 : vector<1x1x128x128xbf16> to vector<128x128xbf16>
    %cst_18 = arith.constant dense<0.000000e+00> : vector<128x128xf32>
    %19 = tpu.matmul %16, %18, %cst_18 {dimension_numbers = #tpu.dot_dimension_numbers<[1], [0], [0], [1], [0, 0, 1, 1], [], []>} : vector<128x128xbf16>, vector<128x128xbf16>, vector<128x128xf32> -> vector<128x128xf32>
    %20 = arith.addf %14, %19 : vector<128x128xf32>
    %c9 = arith.constant 9 : index
    %c0_19 = arith.constant 0 : index
    %21 = tpu.strided_load %arg5[%c9, %c0_19] {strides = array<i32: 2, 1>} : memref<264x128xf32, #tpu.memory_space<vmem>>, vector<128x128xf32>
    %22 = arith.truncf %21 : vector<128x128xf32> to vector<128x128xbf16>
    %c0_20 = arith.constant 0 : index
    %c2 = arith.constant 2 : index
    %c0_21 = arith.constant 0 : index
    %c0_22 = arith.constant 0 : index
    %23 = vector.load %arg2[%c0_20, %c2, %c0_21, %c0_22] : memref<5x3x128x128xbf16, #tpu.memory_space<vmem>>, vector<1x1x128x128xbf16>
    %24 = vector.shape_cast %23 : vector<1x1x128x128xbf16> to vector<128x128xbf16>
    %cst_23 = arith.constant dense<0.000000e+00> : vector<128x128xf32>
    %25 = tpu.matmul %22, %24, %cst_23 {dimension_numbers = #tpu.dot_dimension_numbers<[1], [0], [0], [1], [0, 0, 1, 1], [], []>} : vector<128x128xbf16>, vector<128x128xbf16>, vector<128x128xf32> -> vector<128x128xf32>
    %26 = arith.addf %20, %25 : vector<128x128xf32>
    %cst_24 = arith.constant 0.000000e+00 : f32
    %27 = vector.broadcast %cst_24 : f32 to vector<128x128xf32>
    %28 = arith.maximumf %26, %27 : vector<128x128xf32>
    %c8_25 = arith.constant 8 : index
    %c0_26 = arith.constant 0 : index
    %29 = vector.load %arg5[%c8_25, %c0_26] : memref<264x128xf32, #tpu.memory_space<vmem>>, vector<128x128xf32>
    tpu.vector_store %arg5[%c8_25, %c0_26], %28 {strides = array<i32>} : memref<264x128xf32, #tpu.memory_space<vmem>>, vector<128x128xf32>,
    %30 = vector.extract_strided_slice %6 {offsets = [1, 0], sizes = [1, 128], strides = [1, 1]} : vector<5x128xf32> to vector<1x128xf32>
    %c7_27 = arith.constant 7 : index
    %c0_28 = arith.constant 0 : index
    %31 = tpu.strided_load %arg5[%c7_27, %c0_28] {strides = array<i32: 2, 1>} : memref<264x128xf32, #tpu.memory_space<vmem>>, vector<64x128xf32>
    %32 = arith.truncf %31 : vector<64x128xf32> to vector<64x128xbf16>
    %c1_29 = arith.constant 1 : index
    %c0_30 = arith.constant 0 : index
    %c0_31 = arith.constant 0 : index
    %c0_32 = arith.constant 0 : index
    %33 = vector.load %arg2[%c1_29, %c0_30, %c0_31, %c0_32] : memref<5x3x128x128xbf16, #tpu.memory_space<vmem>>, vector<1x1x128x128xbf16>
    %34 = vector.shape_cast %33 : vector<1x1x128x128xbf16> to vector<128x128xbf16>
    %cst_33 = arith.constant dense<0.000000e+00> : vector<64x128xf32>
    %35 = tpu.matmul %32, %34, %cst_33 {dimension_numbers = #tpu.dot_dimension_numbers<[1], [0], [0], [1], [0, 0, 1, 1], [], []>} : vector<64x128xbf16>, vector<128x128xbf16>, vector<64x128xf32> -> vector<64x128xf32>
    %36 = vector.broadcast %30 : vector<1x128xf32> to vector<64x128xf32>
    %37 = arith.addf %36, %35 : vector<64x128xf32>
    %c8_34 = arith.constant 8 : index
    %c0_35 = arith.constant 0 : index
    %38 = tpu.strided_load %arg5[%c8_34, %c0_35] {strides = array<i32: 2, 1>} : memref<264x128xf32, #tpu.memory_space<vmem>>, vector<64x128xf32>
    %39 = arith.truncf %38 : vector<64x128xf32> to vector<64x128xbf16>
    %c1_36 = arith.constant 1 : index
    %c1_37 = arith.constant 1 : index
    %c0_38 = arith.constant 0 : index
    %c0_39 = arith.constant 0 : index
    %40 = vector.load %arg2[%c1_36, %c1_37, %c0_38, %c0_39] : memref<5x3x128x128xbf16, #tpu.memory_space<vmem>>, vector<1x1x128x128xbf16>
    %41 = vector.shape_cast %40 : vector<1x1x128x128xbf16> to vector<128x128xbf16>
    %cst_40 = arith.constant dense<0.000000e+00> : vector<64x128xf32>
    %42 = tpu.matmul %39, %41, %cst_40 {dimension_numbers = #tpu.dot_dimension_numbers<[1], [0], [0], [1], [0, 0, 1, 1], [], []>} : vector<64x128xbf16>, vector<128x128xbf16>, vector<64x128xf32> -> vector<64x128xf32>
    %43 = arith.addf %37, %42 : vector<64x128xf32>
    %c9_41 = arith.constant 9 : index
    %c0_42 = arith.constant 0 : index
    %44 = tpu.strided_load %arg5[%c9_41, %c0_42] {strides = array<i32: 2, 1>} : memref<264x128xf32, #tpu.memory_space<vmem>>, vector<64x128xf32>
    %45 = arith.truncf %44 : vector<64x128xf32> to vector<64x128xbf16>
    %c1_43 = arith.constant 1 : index
    %c2_44 = arith.constant 2 : index
    %c0_45 = arith.constant 0 : index
    %c0_46 = arith.constant 0 : index
    %46 = vector.load %arg2[%c1_43, %c2_44, %c0_45, %c0_46] : memref<5x3x128x128xbf16, #tpu.memory_space<vmem>>, vector<1x1x128x128xbf16>
    %47 = vector.shape_cast %46 : vector<1x1x128x128xbf16> to vector<128x128xbf16>
    %cst_47 = arith.constant dense<0.000000e+00> : vector<64x128xf32>
    %48 = tpu.matmul %45, %47, %cst_47 {dimension_numbers = #tpu.dot_dimension_numbers<[1], [0], [0], [1], [0, 0, 1, 1], [], []>} : vector<64x128xbf16>, vector<128x128xbf16>, vector<64x128xf32> -> vector<64x128xf32>
    %49 = arith.addf %43, %48 : vector<64x128xf32>
    %cst_48 = arith.constant 0.000000e+00 : f32
    %50 = vector.broadcast %cst_48 : f32 to vector<64x128xf32>
    %51 = arith.maximumf %49, %50 : vector<64x128xf32>
    %c8_49 = arith.constant 8 : index
    %c0_50 = arith.constant 0 : index
    %52 = vector.load %arg5[%c8_49, %c0_50] : memref<264x128xf32, #tpu.memory_space<vmem>>, vector<64x128xf32>
    tpu.vector_store %arg5[%c8_49, %c0_50], %51 {strides = array<i32>} : memref<264x128xf32, #tpu.memory_space<vmem>>, vector<64x128xf32>,
    %53 = vector.extract_strided_slice %6 {offsets = [2, 0], sizes = [1, 128], strides = [1, 1]} : vector<5x128xf32> to vector<1x128xf32>
    %c7_51 = arith.constant 7 : index
    %c0_52 = arith.constant 0 : index
    %54 = tpu.strided_load %arg5[%c7_51, %c0_52] {strides = array<i32: 2, 1>} : memref<264x128xf32, #tpu.memory_space<vmem>>, vector<32x128xf32>
    %55 = arith.truncf %54 : vector<32x128xf32> to vector<32x128xbf16>
    %c2_53 = arith.constant 2 : index
    %c0_54 = arith.constant 0 : index
    %c0_55 = arith.constant 0 : index
    %c0_56 = arith.constant 0 : index
    %56 = vector.load %arg2[%c2_53, %c0_54, %c0_55, %c0_56] : memref<5x3x128x128xbf16, #tpu.memory_space<vmem>>, vector<1x1x128x128xbf16>
    %57 = vector.shape_cast %56 : vector<1x1x128x128xbf16> to vector<128x128xbf16>
    %cst_57 = arith.constant dense<0.000000e+00> : vector<32x128xf32>
    %58 = tpu.matmul %55, %57, %cst_57 {dimension_numbers = #tpu.dot_dimension_numbers<[1], [0], [0], [1], [0, 0, 1, 1], [], []>} : vector<32x128xbf16>, vector<128x128xbf16>, vector<32x128xf32> -> vector<32x128xf32>
    %59 = vector.broadcast %53 : vector<1x128xf32> to vector<32x128xf32>
    %60 = arith.addf %59, %58 : vector<32x128xf32>
    %c8_58 = arith.constant 8 : index
    %c0_59 = arith.constant 0 : index
    %61 = tpu.strided_load %arg5[%c8_58, %c0_59] {strides = array<i32: 2, 1>} : memref<264x128xf32, #tpu.memory_space<vmem>>, vector<32x128xf32>
    %62 = arith.truncf %61 : vector<32x128xf32> to vector<32x128xbf16>
    %c2_60 = arith.constant 2 : index
    %c1_61 = arith.constant 1 : index
    %c0_62 = arith.constant 0 : index
    %c0_63 = arith.constant 0 : index
    %63 = vector.load %arg2[%c2_60, %c1_61, %c0_62, %c0_63] : memref<5x3x128x128xbf16, #tpu.memory_space<vmem>>, vector<1x1x128x128xbf16>
    %64 = vector.shape_cast %63 : vector<1x1x128x128xbf16> to vector<128x128xbf16>
    %cst_64 = arith.constant dense<0.000000e+00> : vector<32x128xf32>
    %65 = tpu.matmul %62, %64, %cst_64 {dimension_numbers = #tpu.dot_dimension_numbers<[1], [0], [0], [1], [0, 0, 1, 1], [], []>} : vector<32x128xbf16>, vector<128x128xbf16>, vector<32x128xf32> -> vector<32x128xf32>
    %66 = arith.addf %60, %65 : vector<32x128xf32>
    %c9_65 = arith.constant 9 : index
    %c0_66 = arith.constant 0 : index
    %67 = tpu.strided_load %arg5[%c9_65, %c0_66] {strides = array<i32: 2, 1>} : memref<264x128xf32, #tpu.memory_space<vmem>>, vector<32x128xf32>
    %68 = arith.truncf %67 : vector<32x128xf32> to vector<32x128xbf16>
    %c2_67 = arith.constant 2 : index
    %c2_68 = arith.constant 2 : index
    %c0_69 = arith.constant 0 : index
    %c0_70 = arith.constant 0 : index
    %69 = vector.load %arg2[%c2_67, %c2_68, %c0_69, %c0_70] : memref<5x3x128x128xbf16, #tpu.memory_space<vmem>>, vector<1x1x128x128xbf16>
    %70 = vector.shape_cast %69 : vector<1x1x128x128xbf16> to vector<128x128xbf16>
    %cst_71 = arith.constant dense<0.000000e+00> : vector<32x128xf32>
    %71 = tpu.matmul %68, %70, %cst_71 {dimension_numbers = #tpu.dot_dimension_numbers<[1], [0], [0], [1], [0, 0, 1, 1], [], []>} : vector<32x128xbf16>, vector<128x128xbf16>, vector<32x128xf32> -> vector<32x128xf32>
    %72 = arith.addf %66, %71 : vector<32x128xf32>
    %cst_72 = arith.constant 0.000000e+00 : f32
    %73 = vector.broadcast %cst_72 : f32 to vector<32x128xf32>
    %74 = arith.maximumf %72, %73 : vector<32x128xf32>
    %c8_73 = arith.constant 8 : index
    %c0_74 = arith.constant 0 : index
    %75 = vector.load %arg5[%c8_73, %c0_74] : memref<264x128xf32, #tpu.memory_space<vmem>>, vector<32x128xf32>
    tpu.vector_store %arg5[%c8_73, %c0_74], %74 {strides = array<i32>} : memref<264x128xf32, #tpu.memory_space<vmem>>, vector<32x128xf32>,
    %76 = vector.extract_strided_slice %6 {offsets = [3, 0], sizes = [1, 128], strides = [1, 1]} : vector<5x128xf32> to vector<1x128xf32>
    %c7_75 = arith.constant 7 : index
    %c0_76 = arith.constant 0 : index
    %77 = tpu.strided_load %arg5[%c7_75, %c0_76] {strides = array<i32: 2, 1>} : memref<264x128xf32, #tpu.memory_space<vmem>>, vector<16x128xf32>
    %78 = arith.truncf %77 : vector<16x128xf32> to vector<16x128xbf16>
    %c3 = arith.constant 3 : index
    %c0_77 = arith.constant 0 : index
    %c0_78 = arith.constant 0 : index
    %c0_79 = arith.constant 0 : index
    %79 = vector.load %arg2[%c3, %c0_77, %c0_78, %c0_79] : memref<5x3x128x128xbf16, #tpu.memory_space<vmem>>, vector<1x1x128x128xbf16>
    %80 = vector.shape_cast %79 : vector<1x1x128x128xbf16> to vector<128x128xbf16>
    %cst_80 = arith.constant dense<0.000000e+00> : vector<16x128xf32>
    %81 = tpu.matmul %78, %80, %cst_80 {dimension_numbers = #tpu.dot_dimension_numbers<[1], [0], [0], [1], [0, 0, 1, 1], [], []>} : vector<16x128xbf16>, vector<128x128xbf16>, vector<16x128xf32> -> vector<16x128xf32>
    %82 = vector.broadcast %76 : vector<1x128xf32> to vector<16x128xf32>
    %83 = arith.addf %82, %81 : vector<16x128xf32>
    %c8_81 = arith.constant 8 : index
    %c0_82 = arith.constant 0 : index
    %84 = tpu.strided_load %arg5[%c8_81, %c0_82] {strides = array<i32: 2, 1>} : memref<264x128xf32, #tpu.memory_space<vmem>>, vector<16x128xf32>
    %85 = arith.truncf %84 : vector<16x128xf32> to vector<16x128xbf16>
    %c3_83 = arith.constant 3 : index
    %c1_84 = arith.constant 1 : index
    %c0_85 = arith.constant 0 : index
    %c0_86 = arith.constant 0 : index
    %86 = vector.load %arg2[%c3_83, %c1_84, %c0_85, %c0_86] : memref<5x3x128x128xbf16, #tpu.memory_space<vmem>>, vector<1x1x128x128xbf16>
    %87 = vector.shape_cast %86 : vector<1x1x128x128xbf16> to vector<128x128xbf16>
    %cst_87 = arith.constant dense<0.000000e+00> : vector<16x128xf32>
    %88 = tpu.matmul %85, %87, %cst_87 {dimension_numbers = #tpu.dot_dimension_numbers<[1], [0], [0], [1], [0, 0, 1, 1], [], []>} : vector<16x128xbf16>, vector<128x128xbf16>, vector<16x128xf32> -> vector<16x128xf32>
    %89 = arith.addf %83, %88 : vector<16x128xf32>
    %c9_88 = arith.constant 9 : index
    %c0_89 = arith.constant 0 : index
    %90 = tpu.strided_load %arg5[%c9_88, %c0_89] {strides = array<i32: 2, 1>} : memref<264x128xf32, #tpu.memory_space<vmem>>, vector<16x128xf32>
    %91 = arith.truncf %90 : vector<16x128xf32> to vector<16x128xbf16>
    %c3_90 = arith.constant 3 : index
    %c2_91 = arith.constant 2 : index
    %c0_92 = arith.constant 0 : index
    %c0_93 = arith.constant 0 : index
    %92 = vector.load %arg2[%c3_90, %c2_91, %c0_92, %c0_93] : memref<5x3x128x128xbf16, #tpu.memory_space<vmem>>, vector<1x1x128x128xbf16>
    %93 = vector.shape_cast %92 : vector<1x1x128x128xbf16> to vector<128x128xbf16>
    %cst_94 = arith.constant dense<0.000000e+00> : vector<16x128xf32>
    %94 = tpu.matmul %91, %93, %cst_94 {dimension_numbers = #tpu.dot_dimension_numbers<[1], [0], [0], [1], [0, 0, 1, 1], [], []>} : vector<16x128xbf16>, vector<128x128xbf16>, vector<16x128xf32> -> vector<16x128xf32>
    %95 = arith.addf %89, %94 : vector<16x128xf32>
    %cst_95 = arith.constant 0.000000e+00 : f32
    %96 = vector.broadcast %cst_95 : f32 to vector<16x128xf32>
    %97 = arith.maximumf %95, %96 : vector<16x128xf32>
    %c8_96 = arith.constant 8 : index
    %c0_97 = arith.constant 0 : index
    %98 = vector.load %arg5[%c8_96, %c0_97] : memref<264x128xf32, #tpu.memory_space<vmem>>, vector<16x128xf32>
    tpu.vector_store %arg5[%c8_96, %c0_97], %97 {strides = array<i32>} : memref<264x128xf32, #tpu.memory_space<vmem>>, vector<16x128xf32>,
    %99 = vector.extract_strided_slice %6 {offsets = [4, 0], sizes = [1, 128], strides = [1, 1]} : vector<5x128xf32> to vector<1x128xf32>
    %c7_98 = arith.constant 7 : index
    %c0_99 = arith.constant 0 : index
    %100 = tpu.strided_load %arg5[%c7_98, %c0_99] {strides = array<i32: 2, 1>} : memref<264x128xf32, #tpu.memory_space<vmem>>, vector<8x128xf32>
    %101 = arith.truncf %100 : vector<8x128xf32> to vector<8x128xbf16>
    %c4 = arith.constant 4 : index
    %c0_100 = arith.constant 0 : index
    %c0_101 = arith.constant 0 : index
    %c0_102 = arith.constant 0 : index
    %102 = vector.load %arg2[%c4, %c0_100, %c0_101, %c0_102] : memref<5x3x128x128xbf16, #tpu.memory_space<vmem>>, vector<1x1x128x128xbf16>
    %103 = vector.shape_cast %102 : vector<1x1x128x128xbf16> to vector<128x128xbf16>
    %cst_103 = arith.constant dense<0.000000e+00> : vector<8x128xf32>
    %104 = tpu.matmul %101, %103, %cst_103 {dimension_numbers = #tpu.dot_dimension_numbers<[1], [0], [0], [1], [0, 0, 1, 1], [], []>} : vector<8x128xbf16>, vector<128x128xbf16>, vector<8x128xf32> -> vector<8x128xf32>
    %105 = vector.broadcast %99 : vector<1x128xf32> to vector<8x128xf32>
    %106 = arith.addf %105, %104 : vector<8x128xf32>
    %c8_104 = arith.constant 8 : index
    %c0_105 = arith.constant 0 : index
    %107 = tpu.strided_load %arg5[%c8_104, %c0_105] {strides = array<i32: 2, 1>} : memref<264x128xf32, #tpu.memory_space<vmem>>, vector<8x128xf32>
    %108 = arith.truncf %107 : vector<8x128xf32> to vector<8x128xbf16>
    %c4_106 = arith.constant 4 : index
    %c1_107 = arith.constant 1 : index
    %c0_108 = arith.constant 0 : index
    %c0_109 = arith.constant 0 : index
    %109 = vector.load %arg2[%c4_106, %c1_107, %c0_108, %c0_109] : memref<5x3x128x128xbf16, #tpu.memory_space<vmem>>, vector<1x1x128x128xbf16>
    %110 = vector.shape_cast %109 : vector<1x1x128x128xbf16> to vector<128x128xbf16>
    %cst_110 = arith.constant dense<0.000000e+00> : vector<8x128xf32>
    %111 = tpu.matmul %108, %110, %cst_110 {dimension_numbers = #tpu.dot_dimension_numbers<[1], [0], [0], [1], [0, 0, 1, 1], [], []>} : vector<8x128xbf16>, vector<128x128xbf16>, vector<8x128xf32> -> vector<8x128xf32>
    %112 = arith.addf %106, %111 : vector<8x128xf32>
    %c9_111 = arith.constant 9 : index
    %c0_112 = arith.constant 0 : index
    %113 = tpu.strided_load %arg5[%c9_111, %c0_112] {strides = array<i32: 2, 1>} : memref<264x128xf32, #tpu.memory_space<vmem>>, vector<8x128xf32>
    %114 = arith.truncf %113 : vector<8x128xf32> to vector<8x128xbf16>
    %c4_113 = arith.constant 4 : index
    %c2_114 = arith.constant 2 : index
    %c0_115 = arith.constant 0 : index
    %c0_116 = arith.constant 0 : index
    %115 = vector.load %arg2[%c4_113, %c2_114, %c0_115, %c0_116] : memref<5x3x128x128xbf16, #tpu.memory_space<vmem>>, vector<1x1x128x128xbf16>
    %116 = vector.shape_cast %115 : vector<1x1x128x128xbf16> to vector<128x128xbf16>
    %cst_117 = arith.constant dense<0.000000e+00> : vector<8x128xf32>
    %117 = tpu.matmul %114, %116, %cst_117 {dimension_numbers = #tpu.dot_dimension_numbers<[1], [0], [0], [1], [0, 0, 1, 1], [], []>} : vector<8x128xbf16>, vector<128x128xbf16>, vector<8x128xf32> -> vector<8x128xf32>
    %118 = arith.addf %112, %117 : vector<8x128xf32>
    %c0_118 = arith.constant 0 : index
    %c0_119 = arith.constant 0 : index
    %c0_120 = arith.constant 0 : index
    %119 = vector.load %arg4[%c0_118, %c0_119, %c0_120] : memref<1x8x128xf32, #tpu.memory_space<vmem>>, vector<1x8x128xf32>
    %120 = vector.shape_cast %119 : vector<1x8x128xf32> to vector<8x128xf32>
    %121 = vector.shape_cast %118 : vector<8x128xf32> to vector<1x8x128xf32>
    tpu.vector_store %arg4[%c0_118, %c0_119, %c0_120], %121 {strides = array<i32>} : memref<1x8x128xf32, #tpu.memory_space<vmem>>, vector<1x8x128xf32>,
    return
  }
  func.func @transform_0(%arg0: i32) -> (i32, i32, i32) {
    %c0_i32 = arith.constant 0 : i32
    %c0_i32_0 = arith.constant 0 : i32
    %c0_i32_1 = arith.constant 0 : i32
    return %arg0, %c0_i32, %c0_i32_0 : i32, i32, i32
  }
  func.func @transform_1(%arg0: i32) -> (i32, i32, i32, i32) {
    %c0_i32 = arith.constant 0 : i32
    %c0_i32_0 = arith.constant 0 : i32
    %c0_i32_1 = arith.constant 0 : i32
    %c0_i32_2 = arith.constant 0 : i32
    %c0_i32_3 = arith.constant 0 : i32
    return %c0_i32, %c0_i32_0, %c0_i32_1, %c0_i32_2 : i32, i32, i32, i32
  }
  func.func @transform_2(%arg0: i32) -> (i32, i32) {
    %c0_i32 = arith.constant 0 : i32
    %c0_i32_0 = arith.constant 0 : i32
    %c0_i32_1 = arith.constant 0 : i32
    return %c0_i32, %c0_i32_0 : i32, i32
  }
  func.func @transform_3(%arg0: i32) -> (i32, i32, i32) {
    %c0_i32 = arith.constant 0 : i32
    %c0_i32_0 = arith.constant 0 : i32
    %c0_i32_1 = arith.constant 0 : i32
    return %arg0, %c0_i32, %c0_i32_0 : i32, i32, i32
  }
}

</mosaic_0001>

<bundles_post_ra>
// kernel: mj_conv2_base_forward.1
= control target key start
LH: loop header
LB: loop body
LE: loop exit
PB: predicated region body
PF: predicated region fallthrough
CT: control target
= control target key end

     0   :  { %8 = vsyncpa [#allocation4], 0  ;;  %s3110_s0 = inlined_call_operand.vmem [shape: bf16[2,256,128], index: 0, kind: input, shape index: {}]   ;;  %s3111_s1 = inlined_call_operand.hbm [shape: bf16[5,3,128,128], index: 1, kind: input, shape index: {}]   ;;  %s3112_s2 = inlined_call_operand.vmem [shape: f32[5,128], index: 2, kind: input, shape index: {}]   ;;  %s3113_s3 = inlined_call_operand.hbm [shape: f32[2,8,128], index: 3, kind: output, shape index: {}]  }
   0x1   :  { %9 = vsyncpa [#allocation5], 0 }
   0x2   :  { %11 = vsyncpa [#allocation5 + $0x1], 0  ;;  %s2942_s12 = smov 0   ;;  %s2944_s13 = smov 0  }
   0x3   :  { %s2946_s14 = smov 0   ;;  %s2948_s15 = smov 0  }
   0x4 LB: > { %s2963_s16 = sadd.s32 4294967295, %s2916_s15   ;;  %s2073_s17 = sadd.s32 4294967294, %s2916_s15   ;;  %s2916_s15 = sphi %s2948_s15, %s3119_s15   ;;  %s2912_s14 = sphi %s2946_s14, %s3118_s14   ;;  %s2908_s13 = sphi %s2944_s13, %s3117_s13   ;;  %s2904_s12 = sphi %s2942_s12, %s3116_s12  }
   0x5   : > { %s2967_s18 = sadd.s32 1, %s2916_s15   ;;  %s92_s19 = sadd.s32 1, %s2912_s14 }
   0x6   : > { %s89_s20 = ssub.s32 %s2916_s15, %s2967_s18  ;;  %p102_p0 = scmp.ne.s32.totalorder %s2912_s14, %s2908_s13 }
   0x7   : > { %p90_p1 = scmp.eq.s32.totalorder %s89_s20, 0  ;;  %p103_p2 = scmp.eq.s32.totalorder %s2963_s16, 1 }
   0x8   : > { %p108_p3 = scmp.ne.s32.totalorder %s2908_s13, %s2904_s12  ;;  %p109_p4 = scmp.eq.s32.totalorder %s2073_s17, 1 }
   0x9   : > { %s2978_s21 = scalar_select %p90_p1, %s2912_s14, %s92_s19  }
   0xa   : > { %p2980_p5 = por %p103_p2, %p102_p0  ;;  %p2984_p6 = por %p109_p4, %p108_p3 }
   0xb   : > { %p2074_p7 = scmp.ge.s32.totalorder %s2916_s15, 1  ;;  %p116_p8 = scmp.lt.s32.totalorder %s2916_s15, 3 }
   0xc   : > { %p2780_p9 = scmp.eq.s32.totalorder %s2963_s16, 0  ;;  %s127_s26 = sshll.u32 %s3111_s1, 4  ;;  %s128_s26 = int_to_ptr.hbm [resolvable:$true] %s127_s26 }
   0xd   : > { %p117_p10 = pnand %p2074_p7, %p116_p8  ;;  %s2918_s27 = smov [#allocation3]  }
   0xe   : > { %s129_s28 = sshll.u32 %s2918_s27, 4  ;;  %s2919_s29 = smov 64   ;;  %s130_s28 = int_to_ptr.vmem [resolvable:$true] %s129_s28 }
   0xf   : > { %p2772_p11 = pneg %p117_p10  ;;  %s2920_s30 = smov 4  }
  0x10   : > { %156 = sbr.rel (%p117_p10) target bundleno = 995 (0x3e3), region = 32 }
  0x11   : > { %p2773_p12 = pnand %p2780_p9, %p2772_p11 }
  0x13   : > { %2775 = dma.hbm_to_vmem [thread:$0]  (!%p2773_p12), %s128_s26, 15360, %s130_s28, [#allocation4], %s2919_s29, %s2919_s29, %s2920_s30  }
  0x15   : > { %2895 = dma.done.wait (%p2780_p9), [#allocation4], 15360  }
  0x16   : > { %2897 = vsyncadd (%p2780_p9), [#allocation4], 4294951936  ;;  %p181_p13 = scmp.lt.s32.totalorder %s2963_s16, 1  ;;  %v2921_v0 = vmov 0.0   ;;  %v2574_v1 = vld [vmem:[#allocation3 + $0x38] sm:$0xff]  ;;  %v2573_v4 = vld [vmem:[#allocation3 + $0x30] sm:$0xff] }
  0x17   : > { %186 = vst [vmem:[#allocation2] sm:$0xff] %v2921_v0  ;;  %v2582_v2 = vld [vmem:[#allocation3 + $0x78] sm:$0xff]  ;;  %388 = vmatpush.bf16.msra.mxu0 %v2574_v1  ;;  %v2581_v5 = vld [vmem:[#allocation3 + $0x70] sm:$0xff]  ;;  %v2572_v7 = vld [vmem:[#allocation3 + $0x28] sm:$0xff]  ;;  %s178_s19 = sand.u32 1, %s2908_s13   ;;  %s2563_s20 = sshll.u32 %s2963_s16, 3 }
  0x18   : > { %s182_s4 = scalar_select %p181_p13, %s2963_s16, 1  ;;  %v2590_v3 = vld [vmem:[#allocation3 + $0xb8] sm:$0xff]  ;;  %559 = vmatpush.bf16.msra.mxu1 %v2582_v2  ;;  %v2589_v6 = vld [vmem:[#allocation3 + $0xb0] sm:$0xff]  ;;  %v2580_v8 = vld [vmem:[#allocation3 + $0x68] sm:$0xff] }
  0x19   : > { %729 = vmatpush.bf16.msra.mxu2 %v2590_v3  ;;  %v2588_v9 = vld [vmem:[#allocation3 + $0xa8] sm:$0xff]  ;;  %v2571_v16 = vld [vmem:[#allocation3 + $0x20] sm:$0xff]  ;;  %v2570_v24 = vld [vmem:[#allocation3 + $0x18] sm:$0xff]  ;;  %s2079_s24 = sshll.u32 %s178_s19, 3  ;;  %s1997_s27 = scalar_lea.hbm %s3113_s3, %s2563_s20 }
  0x1a   : > { %s2566_s5 = sshll.u32 %s182_s4, 7  ;;  %v2579_v17 = vld [vmem:[#allocation3 + $0x60] sm:$0xff]  ;;  %v2578_v25 = vld [vmem:[#allocation3 + $0x58] sm:$0xff]  ;;  %v2569_v28 = vld [vmem:[#allocation3 + $0x10] sm:$0xff]  ;;  %s180_s28 = scalar_lea.vmem [#allocation6], %s2079_s24 }
  0x1b   : > { %s3005_s8 = scalar_lea.vmem %s3110_s0, %s2566_s5  ;;  %389 = vmatpush.bf16.msra.mxu0 %v2573_v4  ;;  %v2587_v20 = vld [vmem:[#allocation3 + $0xa0] sm:$0xff]  ;;  %v2586_v27 = vld [vmem:[#allocation3 + $0x98] sm:$0xff]  ;;  %v2577_v29 = vld [vmem:[#allocation3 + $0x50] sm:$0xff]  ;;  %s1999_s29 = sshll.u32 %s180_s28, 4  ;;  %s2000_s29 = int_to_ptr.vmem [resolvable:$true] %s1999_s29 }
  0x1c   : > { %560 = vmatpush.bf16.msra.mxu1 %v2581_v5  ;;  %v2688_v10 = vld [vmem:[%s3005_s8] sm:$0xff]   ;;  %v2751_v11 = vld [vmem:[%s3005_s8 + $0x8] sm:$0xff]   ;;  %v2752_v12 = vld [vmem:[%s3005_s8 + $0x10] sm:$0xff]   ;;  %s2001_s30 = sshll.u32 %s1997_s27, 4  ;;  %s1987_s16 = scalar_lea.sflag [#allocation5], %s178_s19  ;;  %s2002_s30 = int_to_ptr.hbm [resolvable:$true] %s2001_s30 }
  0x1d   : > { %730 = vmatpush.bf16.msra.mxu2 %v2589_v6  ;;  %v2689_v13 = vunpack.c.l.bf16 %v2688_v10  ;;  %v2690_v14 = vunpack.c.h.bf16 %v2688_v10  ;;  %v2693_v15 = vunpack.c.l.bf16 %v2751_v11  ;;  %v2694_v18 = vunpack.c.h.bf16 %v2751_v11  ;;  %v2753_v19 = vld [vmem:[%s3005_s8 + $0x18] sm:$0xff]   ;;  %v2754_v30 = vld [vmem:[%s3005_s8 + $0x20] sm:$0xff]   ;;  %v2755_v33 = vld [vmem:[%s3005_s8 + $0x28] sm:$0xff]   ;;  %s2864_s4 = sshra.s32 %s2002_s30, 4  ;;  %s2865_s4 = int_to_ptr.hbm [resolvable:$true] %s2864_s4 }
  0x1e   : > { %v2697_v21 = vunpack.c.l.bf16 %v2752_v12  ;;  %v2698_v22 = vunpack.c.h.bf16 %v2752_v12  ;;  %v2701_v23 = vunpack.c.l.bf16 %v2753_v19  ;;  %v2702_v26 = vunpack.c.h.bf16 %v2753_v19  ;;  %v2585_v31 = vld [vmem:[#allocation3 + $0x90] sm:$0xff]  ;;  %v2568_v35 = vld [vmem:[#allocation3 + $0x8] sm:$0xff]  ;;  %v2567_v40 = vld [vmem:[#allocation3] sm:$0xff]  ;;  %s2866_s5 = scalar_lea.hbm %s2865_s4, 8  ;;  %p2871_p3 = scmp.lt.s32.totalorder %s2865_s4, %s3113_s3 }
  0x1f   : > { %390 = vmatpush.bf16.msra.mxu0 %v2572_v7  ;;  %251 = vst [vmem:[#allocation2 + $0x8] sm:$0xff] %v2689_v13  ;;  %v2705_v32 = vunpack.c.l.bf16 %v2754_v30  ;;  %v2706_v34 = vunpack.c.h.bf16 %v2754_v30  ;;  %v2576_v36 = vld [vmem:[#allocation3 + $0x48] sm:$0xff]  ;;  %v2709_v37 = vunpack.c.l.bf16 %v2755_v33  ;;  %v2710_v39 = vunpack.c.h.bf16 %v2755_v33  ;;  %v2575_v43 = vld [vmem:[#allocation3 + $0x40] sm:$0xff]  ;;  %v2757_v53 = vld [vmem:[%s3005_s8 + $0x38] sm:$0xff]   ;;  %p2867_p0 = scmp.ne.s32.totalorder %s2865_s4, %s2866_s5 }
  0x20   : > { %561 = vmatpush.bf16.msra.mxu1 %v2580_v8  ;;  %252 = vst [vmem:[#allocation2 + $0x10] sm:$0xff] %v2690_v14  ;;  %v2584_v38 = vld [vmem:[#allocation3 + $0x88] sm:$0xff]  ;;  %v2583_v46 = vld [vmem:[#allocation3 + $0x80] sm:$0xff]  ;;  %v2717_v56 = vunpack.c.l.bf16 %v2757_v53  ;;  %v2718_v57 = vunpack.c.h.bf16 %v2757_v53  ;;  %v2758_v3 = vld [vmem:[%s3005_s8 + $0x40] sm:$0xff]  }
  0x21   : > { %731 = vmatpush.bf16.msra.mxu2 %v2588_v9  ;;  %253 = vst [vmem:[#allocation2 + $0x18] sm:$0xff] %v2693_v15  ;;  %v2756_v52 = vld [vmem:[%s3005_s8 + $0x30] sm:$0xff]   ;;  %v2759_v4 = vld [vmem:[%s3005_s8 + $0x48] sm:$0xff]   ;;  %v2721_v5 = vunpack.c.l.bf16 %v2758_v3  ;;  %v2722_v6 = vunpack.c.h.bf16 %v2758_v3  ;;  %v2761_v19 = vld [vmem:[%s3005_s8 + $0x58] sm:$0xff]   ;;  %p2868_p1 = pnand %p2867_p0, %p2980_p5 }
  0x22   : > { %254 = vst [vmem:[#allocation2 + $0x20] sm:$0xff] %v2694_v18  ;;  %v2713_v54 = vunpack.c.l.bf16 %v2756_v52  ;;  %v2714_v55 = vunpack.c.h.bf16 %v2756_v52  ;;  %v2725_v7 = vunpack.c.l.bf16 %v2759_v4  ;;  %v2726_v8 = vunpack.c.h.bf16 %v2759_v4  ;;  %v2760_v18 = vld [vmem:[%s3005_s8 + $0x50] sm:$0xff]   ;;  %v2762_v33 = vld [vmem:[%s3005_s8 + $0x60] sm:$0xff]  }
  0x23   : > { %391 = vmatpush.bf16.msra.mxu0 %v2571_v16  ;;  %255 = vst [vmem:[#allocation2 + $0x28] sm:$0xff] %v2697_v21  ;;  %v2730_v21 = vunpack.c.h.bf16 %v2760_v18  ;;  %p2869_p2 = pneg %p2868_p1 }
  0x24   : > { %562 = vmatpush.bf16.msra.mxu1 %v2579_v17  ;;  %256 = vst [vmem:[#allocation2 + $0x30] sm:$0xff] %v2698_v22  ;;  %v2733_v22 = vunpack.c.l.bf16 %v2761_v19 }
  0x25   : > { %732 = vmatpush.bf16.msra.mxu2 %v2587_v20  ;;  %257 = vst [vmem:[#allocation2 + $0x38] sm:$0xff] %v2701_v23  ;;  %v2729_v20 = vunpack.c.l.bf16 %v2760_v18  ;;  %v2734_v23 = vunpack.c.h.bf16 %v2761_v19  ;;  %v2597_v19 = vld [vmem:[#allocation3 + $0xf0] sm:$0xff] }
  0x26   : > { %258 = vst [vmem:[#allocation2 + $0x40] sm:$0xff] %v2702_v26 }
  0x27   : > { %392 = vmatpush.bf16.msra.mxu0 %v2570_v24  ;;  %259 = vst [vmem:[#allocation2 + $0x48] sm:$0xff] %v2705_v32  ;;  %v285_v41 = vld [vmem:[#allocation2 + $0x7] ss:$2 sm:$0xff]  ;;  %v455_v42 = vld [vmem:[#allocation2 + $0x8] ss:$2 sm:$0xff] }
  0x28   : > { %563 = vmatpush.bf16.msra.mxu1 %v2578_v25  ;;  %260 = vst [vmem:[#allocation2 + $0x50] sm:$0xff] %v2706_v34  ;;  %v625_v47 = vld [vmem:[#allocation2 + $0x9] ss:$2 sm:$0xff] }
  0x29   : > { %733 = vmatpush.bf16.msra.mxu2 %v2586_v27  ;;  %v287_v44 = vld [vmem:[#allocation2 + $0x17] ss:$2 sm:$0xff]  ;;  %v457_v45 = vld [vmem:[#allocation2 + $0x18] ss:$2 sm:$0xff]  ;;  %261 = vst [vmem:[#allocation2 + $0x58] sm:$0xff] %v2709_v37  ;;  %v2763_v34 = vld [vmem:[%s3005_s8 + $0x68] sm:$0xff]  }
  0x2a   : > { %v627_v48 = vld [vmem:[#allocation2 + $0x19] ss:$2 sm:$0xff]  ;;  %262 = vst [vmem:[#allocation2 + $0x60] sm:$0xff] %v2710_v39  ;;  %v316_v49 = vpack.c.bf16 %v287_v44, %v285_v41  ;;  %v486_v50 = vpack.c.bf16 %v457_v45, %v455_v42  ;;  %v2741_v37 = vunpack.c.l.bf16 %v2763_v34 }
  0x2b   : > { %393 = vmatpush.bf16.msra.mxu0 %v2569_v28  ;;  %v656_v51 = vpack.c.bf16 %v627_v48, %v625_v47  ;;  %263 = vst [vmem:[#allocation2 + $0x68] sm:$0xff] %v2713_v54  ;;  %v289_v58 = vld [vmem:[#allocation2 + $0x27] ss:$2 sm:$0xff]  ;;  %v459_v60 = vld [vmem:[#allocation2 + $0x28] ss:$2 sm:$0xff] }
  0x2c   : > { %564 = vmatpush.bf16.msra.mxu1 %v2577_v29  ;;  %264 = vst [vmem:[#allocation2 + $0x70] sm:$0xff] %v2714_v55  ;;  %v629_v62 = vld [vmem:[#allocation2 + $0x29] ss:$2 sm:$0xff] }
  0x2d   : > { %734 = vmatpush.bf16.msra.mxu2 %v2585_v31  ;;  %265 = vst [vmem:[#allocation2 + $0x78] sm:$0xff] %v2717_v56  ;;  %v291_v59 = vld [vmem:[#allocation2 + $0x37] ss:$2 sm:$0xff]  ;;  %v461_v61 = vld [vmem:[#allocation2 + $0x38] ss:$2 sm:$0xff] }
  0x2e   : > { %266 = vst [vmem:[#allocation2 + $0x80] sm:$0xff] %v2718_v57  ;;  %v631_v63 = vld [vmem:[#allocation2 + $0x39] ss:$2 sm:$0xff]  ;;  %v317_v0 = vpack.c.bf16 %v291_v59, %v289_v58  ;;  %v487_v1 = vpack.c.bf16 %v461_v61, %v459_v60  ;;  %v2764_v48 = vld [vmem:[%s3005_s8 + $0x70] sm:$0xff]  }
  0x2f   : > { %394 = vmatpush.bf16.msra.mxu0 %v2568_v35  ;;  %v657_v2 = vpack.c.bf16 %v631_v63, %v629_v62  ;;  %267 = vst [vmem:[#allocation2 + $0x88] sm:$0xff] %v2721_v5  ;;  %v293_v9 = vld [vmem:[#allocation2 + $0x47] ss:$2 sm:$0xff]  ;;  %v463_v11 = vld [vmem:[#allocation2 + $0x48] ss:$2 sm:$0xff]  ;;  %v2737_v35 = vunpack.c.l.bf16 %v2762_v33 }
  0x30   : > { %565 = vmatpush.bf16.msra.mxu1 %v2576_v36  ;;  %268 = vst [vmem:[#allocation2 + $0x90] sm:$0xff] %v2722_v6  ;;  %v633_v13 = vld [vmem:[#allocation2 + $0x49] ss:$2 sm:$0xff]  ;;  %v2738_v36 = vunpack.c.h.bf16 %v2762_v33  ;;  %v2609_v33 = vld [vmem:[#allocation3 + $0x150] sm:$0xff] }
  0x31   : > { %735 = vmatpush.bf16.msra.mxu2 %v2584_v38  ;;  %269 = vst [vmem:[#allocation2 + $0x98] sm:$0xff] %v2725_v7  ;;  %v295_v10 = vld [vmem:[#allocation2 + $0x57] ss:$2 sm:$0xff]  ;;  %v465_v12 = vld [vmem:[#allocation2 + $0x58] ss:$2 sm:$0xff]  ;;  %v2742_v38 = vunpack.c.h.bf16 %v2763_v34 }
  0x32   : > { %270 = vst [vmem:[#allocation2 + $0xa0] sm:$0xff] %v2726_v8  ;;  %v635_v14 = vld [vmem:[#allocation2 + $0x59] ss:$2 sm:$0xff]  ;;  %v318_v15 = vpack.c.bf16 %v295_v10, %v293_v9  ;;  %v488_v16 = vpack.c.bf16 %v465_v12, %v463_v11 }
  0x33   : > { %395 = vmatpush.bf16.msra.mxu0 %v2567_v40  ;;  %v658_v17 = vpack.c.bf16 %v635_v14, %v633_v13  ;;  %271 = vst [vmem:[#allocation2 + $0xa8] sm:$0xff] %v2729_v20  ;;  %v297_v24 = vld [vmem:[#allocation2 + $0x67] ss:$2 sm:$0xff]  ;;  %v467_v26 = vld [vmem:[#allocation2 + $0x68] ss:$2 sm:$0xff]  ;;  %v2613_v20 = vld [vmem:[#allocation3 + $0x170] sm:$0xff] }
  0x34   : > { %566 = vmatpush.bf16.msra.mxu1 %v2575_v43  ;;  %272 = vst [vmem:[#allocation2 + $0xb0] sm:$0xff] %v2730_v21  ;;  %v637_v28 = vld [vmem:[#allocation2 + $0x69] ss:$2 sm:$0xff]  ;;  %v2598_v14 = vld [vmem:[#allocation3 + $0xf8] sm:$0xff] }
  0x35   : > { %736 = vmatpush.bf16.msra.mxu2 %v2583_v46  ;;  %273 = vst [vmem:[#allocation2 + $0xb8] sm:$0xff] %v2733_v22  ;;  %v299_v25 = vld [vmem:[#allocation2 + $0x77] ss:$2 sm:$0xff]  ;;  %v469_v27 = vld [vmem:[#allocation2 + $0x78] ss:$2 sm:$0xff]  ;;  %903 = vmatpush.bf16.msra.mxu3 %v2598_v14 }
  0x36   : > { %396 = vmatmul.bf16.vlgmr.msra.gmra.mxu0 %v316_v49  ;;  %274 = vst [vmem:[#allocation2 + $0xc0] sm:$0xff] %v2734_v23  ;;  %v639_v29 = vld [vmem:[#allocation2 + $0x79] ss:$2 sm:$0xff]  ;;  %v319_v30 = vpack.c.bf16 %v299_v25, %v297_v24  ;;  %v489_v31 = vpack.c.bf16 %v469_v27, %v467_v26  ;;  %v2596_v21 = vld [vmem:[#allocation3 + $0xe8] sm:$0xff]  ;;  %v2595_v23 = vld [vmem:[#allocation3 + $0xe0] sm:$0xff] }
  0x37   : > { %567 = vmatmul.bf16.vlgmr.msra.gmra.mxu1 %v486_v50  ;;  %v659_v32 = vpack.c.bf16 %v639_v29, %v637_v28  ;;  %275 = vst [vmem:[#allocation2 + $0xc8] sm:$0xff] %v2737_v35  ;;  %v301_v39 = vld [vmem:[#allocation2 + $0x87] ss:$2 sm:$0xff]  ;;  %v471_v41 = vld [vmem:[#allocation2 + $0x88] ss:$2 sm:$0xff]  ;;  %v2765_v49 = vld [vmem:[%s3005_s8 + $0x78] sm:$0xff]   ;;  %v2745_v50 = vunpack.c.l.bf16 %v2764_v48 }
  0x38   : > { %737 = vmatmul.bf16.vlgmr.msra.gmra.mxu2 %v656_v51  ;;  %276 = vst [vmem:[#allocation2 + $0xd0] sm:$0xff] %v2738_v36  ;;  %v641_v43 = vld [vmem:[#allocation2 + $0x89] ss:$2 sm:$0xff]  ;;  %v2746_v51 = vunpack.c.h.bf16 %v2764_v48  ;;  %v2749_v52 = vunpack.c.l.bf16 %v2765_v49  ;;  %v2750_v53 = vunpack.c.h.bf16 %v2765_v49  ;;  %v3026_v25 = vld [vmem:[%s3112_s2] sm:$0x1f]  ;;  %s2870_s8 = scalar_lea.hbm %s3113_s3, 16 }
  0x39   : > { %277 = vst [vmem:[#allocation2 + $0xd8] sm:$0xff] %v2741_v37  ;;  %v303_v40 = vld [vmem:[#allocation2 + $0x97] ss:$2 sm:$0xff]  ;;  %v473_v42 = vld [vmem:[#allocation2 + $0x98] ss:$2 sm:$0xff]  ;;  %904 = vmatpush.bf16.msra.mxu3 %v2597_v19  ;;  %v2611_v24 = vld [vmem:[#allocation3 + $0x160] sm:$0xff]  ;;  %p2872_p4 = scmp.lt.s32.totalorder %s2870_s8, %s2866_s5 }
  0x3a   : > { %278 = vst [vmem:[#allocation2 + $0xe0] sm:$0xff] %v2742_v38  ;;  %v643_v44 = vld [vmem:[#allocation2 + $0x99] ss:$2 sm:$0xff]  ;;  %v320_v45 = vpack.c.bf16 %v303_v40, %v301_v39  ;;  %v490_v46 = vpack.c.bf16 %v473_v42, %v471_v41  ;;  %v2612_v22 = vld [vmem:[#allocation3 + $0x168] sm:$0xff]  ;;  %v3029_v26 = vperm.slane %v3026_v25, 0  ;;  %v2591_v41 = vld [vmem:[#allocation3 + $0xc0] sm:$0xff] }
  0x3b   : > { %v660_v47 = vpack.c.bf16 %v643_v44, %v641_v43  ;;  %279 = vst [vmem:[#allocation2 + $0xe8] sm:$0xff] %v2745_v50  ;;  %v305_v54 = vld [vmem:[#allocation2 + $0xa7] ss:$2 sm:$0xff]  ;;  %v475_v56 = vld [vmem:[#allocation2 + $0xa8] ss:$2 sm:$0xff]  ;;  %p2873_p7 = por %p2872_p4, %p2871_p3 }
  0x3c   : > { %280 = vst [vmem:[#allocation2 + $0xf0] sm:$0xff] %v2746_v51  ;;  %v645_v58 = vld [vmem:[#allocation2 + $0xa9] ss:$2 sm:$0xff]  ;;  %v2594_v27 = vld [vmem:[#allocation3 + $0xd8] sm:$0xff] }
  0x3d   : > { %281 = vst [vmem:[#allocation2 + $0xf8] sm:$0xff] %v2749_v52  ;;  %v307_v55 = vld [vmem:[#allocation2 + $0xb7] ss:$2 sm:$0xff]  ;;  %v477_v57 = vld [vmem:[#allocation2 + $0xb8] ss:$2 sm:$0xff]  ;;  %905 = vmatpush.bf16.msra.mxu3 %v2596_v21  ;;  %v2607_v42 = vld [vmem:[#allocation3 + $0x140] sm:$0xff]  ;;  %p2874_p8 = pnand %p2873_p7, %p2869_p2 }
  0x3e   : > { %282 = vst [vmem:[#allocation2 + $0x100] sm:$0xff] %v2750_v53  ;;  %v647_v59 = vld [vmem:[#allocation2 + $0xb9] ss:$2 sm:$0xff]  ;;  %v321_v60 = vpack.c.bf16 %v307_v55, %v305_v54  ;;  %v491_v61 = vpack.c.bf16 %v477_v57, %v475_v56  ;;  %v2592_v35 = vld [vmem:[#allocation3 + $0xc8] sm:$0xff] }
  0x3f   : > { %v661_v62 = vpack.c.bf16 %v647_v59, %v645_v58  ;;  %v309_v63 = vld [vmem:[#allocation2 + $0xc7] ss:$2 sm:$0xff] }
  0x40   : > { %v649_v3 = vld [vmem:[#allocation2 + $0xc9] ss:$2 sm:$0xff]  ;;  %v2610_v28 = vld [vmem:[#allocation3 + $0x158] sm:$0xff] }
  0x41   : > { %v651_v4 = vld [vmem:[#allocation2 + $0xd9] ss:$2 sm:$0xff]  ;;  %906 = vmatpush.bf16.msra.mxu3 %v2595_v23  ;;  %v2608_v36 = vld [vmem:[#allocation3 + $0x148] sm:$0xff] }
  0x42   : > { %v662_v7 = vpack.c.bf16 %v651_v4, %v649_v3 }
  0x43   : > { %v313_v8 = vld [vmem:[#allocation2 + $0xe7] ss:$2 sm:$0xff]  ;;  %v483_v10 = vld [vmem:[#allocation2 + $0xe8] ss:$2 sm:$0xff] }
  0x44   : > { %v653_v12 = vld [vmem:[#allocation2 + $0xe9] ss:$2 sm:$0xff] }
  0x45   : > { %v315_v9 = vld [vmem:[#allocation2 + $0xf7] ss:$2 sm:$0xff]  ;;  %v485_v11 = vld [vmem:[#allocation2 + $0xf8] ss:$2 sm:$0xff]  ;;  %907 = vmatpush.bf16.msra.mxu3 %v2594_v27 }
  0x46   : > { %401 = vmatmul.bf16.gmra.mxu0 %v317_v0  ;;  %v311_v0 = vld [vmem:[#allocation2 + $0xd7] ss:$2 sm:$0xff] }
  0x47   : > { %572 = vmatmul.bf16.gmra.mxu1 %v487_v1  ;;  %v479_v1 = vld [vmem:[#allocation2 + $0xc8] ss:$2 sm:$0xff]  ;;  %v322_v5 = vpack.c.bf16 %v311_v0, %v309_v63  ;;  %v655_v13 = vld [vmem:[#allocation2 + $0xf9] ss:$2 sm:$0xff] }
  0x48   : > { %742 = vmatmul.bf16.gmra.mxu2 %v657_v2  ;;  %v481_v2 = vld [vmem:[#allocation2 + $0xd8] ss:$2 sm:$0xff]  ;;  %v663_v18 = vpack.c.bf16 %v655_v13, %v653_v12 }
  0x49   : > { %v492_v6 = vpack.c.bf16 %v481_v2, %v479_v1 }
  0x56   : > { %406 = vmatmul.bf16.gmra.mxu0 %v318_v15  ;;  %v2614_v15 = vld [vmem:[#allocation3 + $0x178] sm:$0xff] }
  0x57   : > { %577 = vmatmul.bf16.gmra.mxu1 %v488_v16  ;;  %v323_v16 = vpack.c.bf16 %v315_v9, %v313_v8  ;;  %1140 = vmatpush.bf16.msrb.mxu0 %v2614_v15 }
  0x58   : > { %747 = vmatmul.bf16.gmra.mxu2 %v658_v17  ;;  %v493_v17 = vpack.c.bf16 %v485_v11, %v483_v10 }
  0x5b   : > { %1141 = vmatpush.bf16.msrb.mxu0 %v2613_v20 }
  0x5f   : > { %1142 = vmatpush.bf16.msrb.mxu0 %v2612_v22 }
  0x63   : > { %1143 = vmatpush.bf16.msrb.mxu0 %v2611_v24 }
  0x66   : > { %411 = vmatmul.bf16.gmra.mxu0 %v319_v30 }
  0x67   : > { %582 = vmatmul.bf16.gmra.mxu1 %v489_v31  ;;  %1144 = vmatpush.bf16.msrb.mxu0 %v2610_v28 }
  0x68   : > { %752 = vmatmul.bf16.gmra.mxu2 %v659_v32  ;;  %v2593_v32 = vld [vmem:[#allocation3 + $0xd0] sm:$0xff] }
  0x69   : > { %908 = vmatpush.bf16.msra.mxu3 %v2593_v32 }
  0x6b   : > { %1145 = vmatpush.bf16.msrb.mxu0 %v2609_v33 }
  0x6d   : > { %909 = vmatpush.bf16.msra.mxu3 %v2592_v35 }
  0x6f   : > { %1146 = vmatpush.bf16.msrb.mxu0 %v2608_v36 }
  0x71   : > { %910 = vmatpush.bf16.msra.mxu3 %v2591_v41 }
  0x73   : > { %1147 = vmatpush.bf16.msrb.mxu0 %v2607_v42 }
  0x76   : > { %416 = vmatmul.bf16.gmra.mxu0 %v320_v45 }
  0x77   : > { %587 = vmatmul.bf16.gmra.mxu1 %v490_v46 }
  0x78   : > { %757 = vmatmul.bf16.gmra.mxu2 %v660_v47 }
  0x86   : > { %421 = vmatmul.bf16.gmra.mxu0 %v321_v60 }
  0x87   : > { %592 = vmatmul.bf16.gmra.mxu1 %v491_v61 }
  0x88   : > { %762 = vmatmul.bf16.gmra.mxu2 %v661_v62 }
  0x96   : > { %426 = vmatmul.bf16.gmra.mxu0 %v322_v5 }
  0x97   : > { %597 = vmatmul.bf16.gmra.mxu1 %v492_v6 }
  0x98   : > { %767 = vmatmul.bf16.gmra.mxu2 %v662_v7 }
  0xa6   : > { %431 = vmatmul.bf16.gmra.mxu0 %v323_v16 }
  0xa7   : > { %602 = vmatmul.bf16.gmra.mxu1 %v493_v17 }
  0xa8   : > { %772 = vmatmul.bf16.gmra.mxu2 %v663_v18 }
  0xb3   : > { %v397_v29 = vpop.f32.mrf.mxu0 }
  0xb4   : > { %v568_v30 = vpop.f32.mrf.mxu1  ;;  %v438_v31 = vadd.f32 %v3029_v26, %v397_v29 }
  0xb6   : > { %v608_v34 = vadd.f32 %v568_v30, %v438_v31  ;;  %v2606_v31 = vld [vmem:[#allocation3 + $0x138] sm:$0xff] }
  0xb7   : > { %1026 = vmatpush.bf16.msrb.mxu3 %v2606_v31 }
  0xbb   : > { %v738_v37 = vpop.f32.mrf.mxu2  ;;  %v399_v39 = vpop.f32.mrf.mxu0 }
  0xbc   : > { %v778_v38 = vadd.f32 %v738_v37, %v608_v34  ;;  %v570_v40 = vpop.f32.mrf.mxu1  ;;  %v439_v44 = vadd.f32 %v3029_v26, %v399_v39 }
  0xbe   : > { %v794_v43 = vmax.f32 %v778_v38, 0.0  ;;  %v609_v45 = vadd.f32 %v570_v40, %v439_v44  ;;  %v2605_v40 = vld [vmem:[#allocation3 + $0x130] sm:$0xff] }
  0xbf   : > { %1027 = vmatpush.bf16.msrb.mxu3 %v2605_v40 }
  0xc0   : > { %810 = vst [vmem:[#allocation2 + $0x8] sm:$0xff] %v794_v43 }
  0xc3   : > { %v740_v46 = vpop.f32.mrf.mxu2  ;;  %v402_v48 = vpop.f32.mrf.mxu0 }
  0xc4   : > { %v779_v47 = vadd.f32 %v740_v46, %v609_v45  ;;  %v573_v49 = vpop.f32.mrf.mxu1  ;;  %v440_v50 = vadd.f32 %v3029_v26, %v402_v48 }
  0xc6   : > { %v795_v51 = vmax.f32 %v779_v47, 0.0  ;;  %v610_v52 = vadd.f32 %v573_v49, %v440_v50 }
  0xc8   : > { %811 = vst [vmem:[#allocation2 + $0x10] sm:$0xff] %v795_v51 }
  0xcb   : > { %v743_v53 = vpop.f32.mrf.mxu2  ;;  %v404_v55 = vpop.f32.mrf.mxu0 }
  0xcc   : > { %v780_v54 = vadd.f32 %v743_v53, %v610_v52  ;;  %v575_v56 = vpop.f32.mrf.mxu1  ;;  %v441_v58 = vadd.f32 %v3029_v26, %v404_v55 }
  0xce   : > { %v796_v57 = vmax.f32 %v780_v54, 0.0  ;;  %v611_v59 = vadd.f32 %v575_v56, %v441_v58  ;;  %v2604_v54 = vld [vmem:[#allocation3 + $0x128] sm:$0xff] }
  0xcf   : > { %v826_v9 = vld [vmem:[#allocation2 + $0x7] ss:$2 sm:$0xff]  ;;  %1028 = vmatpush.bf16.msrb.mxu3 %v2604_v54 }
  0xd0   : > { %812 = vst [vmem:[#allocation2 + $0x18] sm:$0xff] %v796_v57  ;;  %v1063_v11 = vld [vmem:[#allocation2 + $0x9] ss:$2 sm:$0xff] }
  0xd3   : > { %v745_v60 = vpop.f32.mrf.mxu2  ;;  %v407_v62 = vpop.f32.mrf.mxu0 }
  0xd4   : > { %v781_v61 = vadd.f32 %v745_v60, %v611_v59  ;;  %v578_v63 = vpop.f32.mrf.mxu1  ;;  %v442_v0 = vadd.f32 %v3029_v26, %v407_v62  ;;  %v2603_v62 = vld [vmem:[#allocation3 + $0x120] sm:$0xff] }
  0xd5   : > { %1029 = vmatpush.bf16.msrb.mxu3 %v2603_v62  ;;  %v2622_v62 = vld [vmem:[#allocation3 + $0x1b8] sm:$0xff] }
  0xd6   : > { %v797_v1 = vmax.f32 %v781_v61, 0.0  ;;  %v612_v2 = vadd.f32 %v578_v63, %v442_v0  ;;  %1264 = vmatpush.bf16.msrb.mxu1 %v2622_v62 }
  0xd8   : > { %813 = vst [vmem:[#allocation2 + $0x20] sm:$0xff] %v797_v1 }
  0xdb   : > { %v748_v3 = vpop.f32.mrf.mxu2  ;;  %v409_v5 = vpop.f32.mrf.mxu0 }
  0xdc   : > { %v782_v4 = vadd.f32 %v748_v3, %v612_v2  ;;  %v580_v6 = vpop.f32.mrf.mxu1  ;;  %v443_v8 = vadd.f32 %v3029_v26, %v409_v5  ;;  %v2602_v5 = vld [vmem:[#allocation3 + $0x118] sm:$0xff] }
  0xdd   : > { %1030 = vmatpush.bf16.msrb.mxu3 %v2602_v5 }
  0xde   : > { %v798_v7 = vmax.f32 %v782_v4, 0.0  ;;  %v613_v15 = vadd.f32 %v580_v6, %v443_v8 }
  0xdf   : > { %v827_v10 = vld [vmem:[#allocation2 + $0x17] ss:$2 sm:$0xff] }
  0xe0   : > { %v1064_v12 = vld [vmem:[#allocation2 + $0x19] ss:$2 sm:$0xff]  ;;  %814 = vst [vmem:[#allocation2 + $0x28] sm:$0xff] %v798_v7  ;;  %v834_v13 = vpack.c.bf16 %v827_v10, %v826_v9 }
  0xe1   : > { %v1071_v14 = vpack.c.bf16 %v1064_v12, %v1063_v11 }
  0xe2   : > { %911 = vmatmul.bf16.vlgmr.msra.gmra.mxu3 %v834_v13 }
  0xe3   : > { %1148 = vmatmul.bf16.vlgmr.msrb.gmra.mxu0 %v1071_v14  ;;  %v750_v16 = vpop.f32.mrf.mxu2  ;;  %v412_v18 = vpop.f32.mrf.mxu0  ;;  %v2601_v14 = vld [vmem:[#allocation3 + $0x110] sm:$0xff] }
  0xe4   : > { %v783_v17 = vadd.f32 %v750_v16, %v613_v15  ;;  %v583_v19 = vpop.f32.mrf.mxu1  ;;  %v444_v20 = vadd.f32 %v3029_v26, %v412_v18  ;;  %1031 = vmatpush.bf16.msrb.mxu3 %v2601_v14  ;;  %v2626_v14 = vld [vmem:[#allocation3 + $0x1d8] sm:$0xff] }
  0xe6   : > { %v799_v21 = vmax.f32 %v783_v17, 0.0  ;;  %v614_v22 = vadd.f32 %v583_v19, %v444_v20 }
  0xe8   : > { %815 = vst [vmem:[#allocation2 + $0x30] sm:$0xff] %v799_v21 }
  0xeb   : > { %v753_v23 = vpop.f32.mrf.mxu2  ;;  %v414_v27 = vpop.f32.mrf.mxu0 }
  0xec   : > { %v784_v24 = vadd.f32 %v753_v23, %v614_v22  ;;  %v585_v28 = vpop.f32.mrf.mxu1  ;;  %v445_v30 = vadd.f32 %v3029_v26, %v414_v27 }
  0xee   : > { %v800_v29 = vmax.f32 %v784_v24, 0.0  ;;  %v615_v32 = vadd.f32 %v585_v28, %v445_v30  ;;  %v2600_v30 = vld [vmem:[#allocation3 + $0x108] sm:$0xff] }
  0xef   : > { %v828_v47 = vld [vmem:[#allocation2 + $0x27] ss:$2 sm:$0xff]  ;;  %1032 = vmatpush.bf16.msrb.mxu3 %v2600_v30  ;;  %v3054_v30 = vperm.slane %v3026_v25, 1 }
  0xf0   : > { %816 = vst [vmem:[#allocation2 + $0x38] sm:$0xff] %v800_v29  ;;  %v1065_v49 = vld [vmem:[#allocation2 + $0x29] ss:$2 sm:$0xff] }
  0xf3   : > { %v755_v33 = vpop.f32.mrf.mxu2  ;;  %v417_v35 = vpop.f32.mrf.mxu0 }
  0xf4   : > { %v785_v34 = vadd.f32 %v755_v33, %v615_v32  ;;  %v588_v36 = vpop.f32.mrf.mxu1  ;;  %v446_v37 = vadd.f32 %v3029_v26, %v417_v35 }
  0xf6   : > { %v801_v38 = vmax.f32 %v785_v34, 0.0  ;;  %v616_v39 = vadd.f32 %v588_v36, %v446_v37  ;;  %v2599_v34 = vld [vmem:[#allocation3 + $0x100] sm:$0xff] }
  0xf7   : > { %1033 = vmatpush.bf16.msrb.mxu3 %v2599_v34  ;;  %v2616_v34 = vld [vmem:[#allocation3 + $0x188] sm:$0xff] }
  0xf8   : > { %817 = vst [vmem:[#allocation2 + $0x40] sm:$0xff] %v801_v38 }
  0xfb   : > { %v758_v41 = vpop.f32.mrf.mxu2  ;;  %v419_v43 = vpop.f32.mrf.mxu0 }
  0xfc   : > { %v786_v42 = vadd.f32 %v758_v41, %v616_v39  ;;  %v590_v44 = vpop.f32.mrf.mxu1  ;;  %v447_v46 = vadd.f32 %v3029_v26, %v419_v43 }
  0xfe   : > { %v802_v45 = vmax.f32 %v786_v42, 0.0  ;;  %v617_v53 = vadd.f32 %v590_v44, %v447_v46 }
  0xff   : > { %v829_v48 = vld [vmem:[#allocation2 + $0x37] ss:$2 sm:$0xff] }
 0x100   : > { %v1066_v50 = vld [vmem:[#allocation2 + $0x39] ss:$2 sm:$0xff]  ;;  %818 = vst [vmem:[#allocation2 + $0x48] sm:$0xff] %v802_v45  ;;  %v835_v51 = vpack.c.bf16 %v829_v48, %v828_v47 }
 0x101   : > { %v1072_v52 = vpack.c.bf16 %v1066_v50, %v1065_v49 }
 0x102   : > { %916 = vmatmul.bf16.gmra.mxu3 %v835_v51 }
 0x103   : > { %1153 = vmatmul.bf16.gmra.mxu0 %v1072_v52  ;;  %v760_v55 = vpop.f32.mrf.mxu2  ;;  %v422_v57 = vpop.f32.mrf.mxu0 }
 0x104   : > { %v787_v56 = vadd.f32 %v760_v55, %v617_v53  ;;  %v593_v58 = vpop.f32.mrf.mxu1  ;;  %v448_v59 = vadd.f32 %v3029_v26, %v422_v57  ;;  %v944_v55 = vld [vmem:[#allocation2 + $0x18] ss:$2 sm:$0xff] }
 0x106   : > { %v803_v60 = vmax.f32 %v787_v56, 0.0  ;;  %v618_v61 = vadd.f32 %v593_v58, %v448_v59  ;;  %v942_v56 = vld [vmem:[#allocation2 + $0x8] ss:$2 sm:$0xff] }
 0x107   : > { %v957_v57 = vpack.c.bf16 %v944_v55, %v942_v56  ;;  %v946_v58 = vld [vmem:[#allocation2 + $0x28] ss:$2 sm:$0xff] }
 0x108   : > { %819 = vst [vmem:[#allocation2 + $0x50] sm:$0xff] %v803_v60 }
 0x10b   : > { %v763_v63 = vpop.f32.mrf.mxu2  ;;  %v424_v1 = vpop.f32.mrf.mxu0 }
 0x10c   : > { %v788_v0 = vadd.f32 %v763_v63, %v618_v61  ;;  %v595_v2 = vpop.f32.mrf.mxu1  ;;  %v449_v4 = vadd.f32 %v3029_v26, %v424_v1  ;;  %v2630_v61 = vld [vmem:[#allocation3 + $0x1f8] sm:$0xff]  ;;  %v2629_v1 = vld [vmem:[#allocation3 + $0x1f0] sm:$0xff] }
 0x10d   : > { %1359 = vmatpush.bf16.msrb.mxu2 %v2630_v61 }
 0x10e   : > { %v804_v3 = vmax.f32 %v788_v0, 0.0  ;;  %v619_v6 = vadd.f32 %v595_v2, %v449_v4  ;;  %v2621_v4 = vld [vmem:[#allocation3 + $0x1b0] sm:$0xff] }
 0x10f   : > { %v830_v21 = vld [vmem:[#allocation2 + $0x47] ss:$2 sm:$0xff]  ;;  %v950_v63 = vld [vmem:[#allocation2 + $0x48] ss:$2 sm:$0xff]  ;;  %1265 = vmatpush.bf16.msrb.mxu1 %v2621_v4 }
 0x110   : > { %820 = vst [vmem:[#allocation2 + $0x58] sm:$0xff] %v804_v3  ;;  %v1067_v23 = vld [vmem:[#allocation2 + $0x49] ss:$2 sm:$0xff] }
 0x111   : > { %1360 = vmatpush.bf16.msrb.mxu2 %v2629_v1 }
 0x113   : > { %v765_v7 = vpop.f32.mrf.mxu2  ;;  %v427_v9 = vpop.f32.mrf.mxu0 }
 0x114   : > { %v789_v8 = vadd.f32 %v765_v7, %v619_v6  ;;  %v598_v10 = vpop.f32.mrf.mxu1  ;;  %v450_v11 = vadd.f32 %v3029_v26, %v427_v9  ;;  %v2628_v6 = vld [vmem:[#allocation3 + $0x1e8] sm:$0xff]  ;;  %v2627_v9 = vld [vmem:[#allocation3 + $0x1e0] sm:$0xff] }
 0x115   : > { %v2620_v7 = vld [vmem:[#allocation3 + $0x1a8] sm:$0xff]  ;;  %1361 = vmatpush.bf16.msrb.mxu2 %v2628_v6 }
 0x116   : > { %v805_v12 = vmax.f32 %v789_v8, 0.0  ;;  %v620_v13 = vadd.f32 %v598_v10, %v450_v11  ;;  %1266 = vmatpush.bf16.msrb.mxu1 %v2620_v7  ;;  %v2619_v11 = vld [vmem:[#allocation3 + $0x1a0] sm:$0xff] }
 0x118   : > { %821 = vst [vmem:[#allocation2 + $0x60] sm:$0xff] %v805_v12 }
 0x119   : > { %1362 = vmatpush.bf16.msrb.mxu2 %v2627_v9 }
 0x11a   : > { %1267 = vmatpush.bf16.msrb.mxu1 %v2619_v11 }
 0x11b   : > { %v768_v15 = vpop.f32.mrf.mxu2  ;;  %v429_v17 = vpop.f32.mrf.mxu0 }
 0x11c   : > { %v790_v16 = vadd.f32 %v768_v15, %v620_v13  ;;  %v600_v18 = vpop.f32.mrf.mxu1  ;;  %v451_v20 = vadd.f32 %v3029_v26, %v429_v17  ;;  %v2638_v15 = vld [vmem:[#allocation3 + $0x238] sm:$0xff] }
 0x11d   : > { %1363 = vmatpush.bf16.msrb.mxu2 %v2626_v14  ;;  %1453 = vmatpush.bf16.msra.mxu3 %v2638_v15 }
 0x11e   : > { %v806_v19 = vmax.f32 %v790_v16, 0.0  ;;  %v621_v29 = vadd.f32 %v600_v18, %v451_v20  ;;  %v2618_v16 = vld [vmem:[#allocation3 + $0x198] sm:$0xff]  ;;  %v2637_v18 = vld [vmem:[#allocation3 + $0x230] sm:$0xff] }
 0x11f   : > { %v831_v22 = vld [vmem:[#allocation2 + $0x57] ss:$2 sm:$0xff]  ;;  %v952_v60 = vld [vmem:[#allocation2 + $0x58] ss:$2 sm:$0xff]  ;;  %1268 = vmatpush.bf16.msrb.mxu1 %v2618_v16 }
 0x120   : > { %v1068_v24 = vld [vmem:[#allocation2 + $0x59] ss:$2 sm:$0xff]  ;;  %822 = vst [vmem:[#allocation2 + $0x68] sm:$0xff] %v806_v19  ;;  %v836_v27 = vpack.c.bf16 %v831_v22, %v830_v21  ;;  %v959_v0 = vpack.c.bf16 %v952_v60, %v950_v63  ;;  %v2636_v21 = vld [vmem:[#allocation3 + $0x228] sm:$0xff] }
 0x121   : > { %v1073_v28 = vpack.c.bf16 %v1068_v24, %v1067_v23  ;;  %1454 = vmatpush.bf16.msra.mxu3 %v2637_v18  ;;  %v2625_v20 = vld [vmem:[#allocation3 + $0x1d0] sm:$0xff]  ;;  %v2635_v24 = vld [vmem:[#allocation3 + $0x220] sm:$0xff] }
 0x122   : > { %921 = vmatmul.bf16.gmra.mxu3 %v836_v27  ;;  %v2617_v22 = vld [vmem:[#allocation3 + $0x190] sm:$0xff]  ;;  %1364 = vmatpush.bf16.msrb.mxu2 %v2625_v20 }
 0x123   : > { %1158 = vmatmul.bf16.gmra.mxu0 %v1073_v28  ;;  %v770_v31 = vpop.f32.mrf.mxu2  ;;  %v432_v33 = vpop.f32.mrf.mxu0  ;;  %1269 = vmatpush.bf16.msrb.mxu1 %v2617_v22  ;;  %v2634_v28 = vld [vmem:[#allocation3 + $0x218] sm:$0xff] }
 0x124   : > { %v791_v32 = vadd.f32 %v770_v31, %v621_v29  ;;  %v452_v35 = vadd.f32 %v3029_v26, %v432_v33  ;;  %v603_v37 = vpop.f32.mrf.mxu1  ;;  %v2633_v31 = vld [vmem:[#allocation3 + $0x210] sm:$0xff]  ;;  %v2624_v33 = vld [vmem:[#allocation3 + $0x1c8] sm:$0xff] }
 0x125   : > { %1455 = vmatpush.bf16.msra.mxu3 %v2636_v21 }
 0x126   : > { %v807_v36 = vmax.f32 %v791_v32, 0.0  ;;  %v622_v38 = vadd.f32 %v603_v37, %v452_v35  ;;  %1365 = vmatpush.bf16.msrb.mxu2 %v2624_v33 }
 0x127   : > { %1270 = vmatpush.bf16.msrb.mxu1 %v2616_v34 }
 0x128   : > { %823 = vst [vmem:[#allocation2 + $0x70] sm:$0xff] %v807_v36  ;;  %v2632_v36 = vld [vmem:[#allocation3 + $0x208] sm:$0xff] }
 0x129   : > { %1456 = vmatpush.bf16.msra.mxu3 %v2635_v24 }
 0x12b   : > { %v773_v39 = vpop.f32.mrf.mxu2  ;;  %v434_v41 = vpop.f32.mrf.mxu0 }
 0x12c   : > { %v792_v40 = vadd.f32 %v773_v39, %v622_v38  ;;  %v453_v43 = vadd.f32 %v3029_v26, %v434_v41  ;;  %v605_v44 = vpop.f32.mrf.mxu1  ;;  %v948_v26 = vld [vmem:[#allocation2 + $0x38] ss:$2 sm:$0xff]  ;;  %v2623_v41 = vld [vmem:[#allocation3 + $0x1c0] sm:$0xff] }
 0x12d   : > { %v958_v59 = vpack.c.bf16 %v948_v26, %v946_v58  ;;  %1457 = vmatpush.bf16.msra.mxu3 %v2634_v28  ;;  %1366 = vmatpush.bf16.msrb.mxu2 %v2623_v41 }
 0x12e   : > { %v808_v42 = vmax.f32 %v792_v40, 0.0  ;;  %v623_v45 = vadd.f32 %v605_v44, %v453_v43  ;;  %v2615_v40 = vld [vmem:[#allocation3 + $0x180] sm:$0xff] }
 0x12f   : > { %v832_v49 = vld [vmem:[#allocation2 + $0x67] ss:$2 sm:$0xff]  ;;  %v954_v3 = vld [vmem:[#allocation2 + $0x68] ss:$2 sm:$0xff]  ;;  %1271 = vmatpush.bf16.msrb.mxu1 %v2615_v40 }
 0x130   : > { %824 = vst [vmem:[#allocation2 + $0x78] sm:$0xff] %v808_v42  ;;  %v1069_v51 = vld [vmem:[#allocation2 + $0x69] ss:$2 sm:$0xff] }
 0x131   : > { %1458 = vmatpush.bf16.msra.mxu3 %v2633_v31  ;;  %v2631_v42 = vld [vmem:[#allocation3 + $0x200] sm:$0xff] }
 0x133   : > { %v775_v46 = vpop.f32.mrf.mxu2 }
 0x134   : > { %v793_v47 = vadd.f32 %v775_v46, %v623_v45 }
 0x135   : > { %1459 = vmatpush.bf16.msra.mxu3 %v2632_v36 }
 0x136   : > { %v809_v48 = vmax.f32 %v793_v47, 0.0 }
 0x138   : > { %825 = vst [vmem:[#allocation2 + $0x80] sm:$0xff] %v809_v48 }
 0x139   : > { %1460 = vmatpush.bf16.msra.mxu3 %v2631_v42  ;;  %v2662_v42 = vld [vmem:[#allocation3 + $0x2f8] sm:$0xff] }
 0x13f   : > { %v833_v50 = vld [vmem:[#allocation2 + $0x77] ss:$2 sm:$0xff]  ;;  %v956_v2 = vld [vmem:[#allocation2 + $0x78] ss:$2 sm:$0xff] }
 0x140   : > { %v1070_v52 = vld [vmem:[#allocation2 + $0x79] ss:$2 sm:$0xff]  ;;  %v837_v53 = vpack.c.bf16 %v833_v50, %v832_v49  ;;  %v960_v5 = vpack.c.bf16 %v956_v2, %v954_v3 }
 0x141   : > { %v1074_v54 = vpack.c.bf16 %v1070_v52, %v1069_v51 }
 0x142   : > { %926 = vmatmul.bf16.gmra.mxu3 %v837_v53 }
 0x143   : > { %1163 = vmatmul.bf16.gmra.mxu0 %v1074_v54 }
 0x152   : > { %1034 = vmatmul.bf16.vlgmr.msrb.gmra.mxu3 %v957_v57 }
 0x153   : > { %1721 = vmatpush.bf16.msrb.mxu3 %v2662_v42 }
 0x160   : > { %v1149_v29 = vpop.f32.mrf.mxu0 }
 0x162   : > { %1039 = vmatmul.bf16.gmra.mxu3 %v958_v59 }
 0x165   : > { %v912_v8 = vpop.f32.mrf.mxu3 }
 0x166   : > { %v933_v32 = vadd.f32 %v3054_v30, %v912_v8 }
 0x168   : > { %v1151_v39 = vpop.f32.mrf.mxu0 }
 0x16d   : > { %v914_v10 = vpop.f32.mrf.mxu3 }
 0x16e   : > { %v934_v44 = vadd.f32 %v3054_v30, %v914_v10 }
 0x172   : > { %1044 = vmatmul.bf16.gmra.mxu3 %v959_v0 }
 0x180   : > { %v1154_v48 = vpop.f32.mrf.mxu0 }
 0x182   : > { %1049 = vmatmul.bf16.gmra.mxu3 %v960_v5 }
 0x185   : > { %v917_v12 = vpop.f32.mrf.mxu3 }
 0x186   : > { %v935_v50 = vadd.f32 %v3054_v30, %v917_v12 }
 0x188   : > { %v1156_v55 = vpop.f32.mrf.mxu0 }
 0x18d   : > { %v919_v13 = vpop.f32.mrf.mxu3 }
 0x18e   : > { %v936_v56 = vadd.f32 %v3054_v30, %v919_v13 }
 0x1a0   : > { %v1159_v60 = vpop.f32.mrf.mxu0 }
 0x1a5   : > { %v922_v17 = vpop.f32.mrf.mxu3 }
 0x1a6   : > { %v937_v61 = vadd.f32 %v3054_v30, %v922_v17 }
 0x1a8   : > { %v1161_v12 = vpop.f32.mrf.mxu0 }
 0x1ad   : > { %v3047_v19 = vpop.f32.mrf.mxu3 }
 0x1ae   : > { %v938_v8 = vadd.f32 %v3054_v30, %v3047_v19 }
 0x1c0   : > { %v1164_v18 = vpop.f32.mrf.mxu0 }
 0x1c5   : > { %v3049_v23 = vpop.f32.mrf.mxu3 }
 0x1c6   : > { %v939_v17 = vadd.f32 %v3054_v30, %v3049_v23 }
 0x1c8   : > { %v1166_v31 = vpop.f32.mrf.mxu0 }
 0x1cd   : > { %v3051_v27 = vpop.f32.mrf.mxu3 }
 0x1ce   : > { %v940_v24 = vadd.f32 %v3054_v30, %v3051_v27  ;;  %v2654_v27 = vld [vmem:[#allocation3 + $0x2b8] sm:$0xff] }
 0x1cf   : > { %1637 = vmatpush.bf16.msra.mxu2 %v2654_v27  ;;  %v2646_v30 = vld [vmem:[#allocation3 + $0x278] sm:$0xff] }
 0x1d0   : > { %1552 = vmatpush.bf16.msra.mxu1 %v2646_v30 }
 0x1d5   : > { %v1035_v35 = vpop.f32.mrf.mxu3 }
 0x1d6   : > { %v1055_v37 = vadd.f32 %v1035_v35, %v933_v32 }
 0x1d8   : > { %v1169_v38 = vadd.f32 %v1149_v29, %v1055_v37 }
 0x1da   : > { %v1177_v43 = vmax.f32 %v1169_v38, 0.0 }
 0x1dc   : > { %1185 = vst [vmem:[#allocation2 + $0x8] sm:$0xff] %v1177_v43 }
 0x1dd   : > { %v1037_v45 = vpop.f32.mrf.mxu3 }
 0x1de   : > { %v1056_v46 = vadd.f32 %v1037_v45, %v934_v44  ;;  %v3068_v44 = vperm.slane %v3026_v25, 2  ;;  %v2653_v45 = vld [vmem:[#allocation3 + $0x2b0] sm:$0xff] }
 0x1df   : > { %1638 = vmatpush.bf16.msra.mxu2 %v2653_v45  ;;  %v2677_v45 = vld [vmem:[#allocation3 + $0x370] sm:$0xff] }
 0x1e0   : > { %v1170_v47 = vadd.f32 %v1151_v39, %v1056_v46  ;;  %v2645_v46 = vld [vmem:[#allocation3 + $0x270] sm:$0xff] }
 0x1e1   : > { %1553 = vmatpush.bf16.msra.mxu1 %v2645_v46  ;;  %v2685_v46 = vld [vmem:[#allocation3 + $0x3b0] sm:$0xff] }
 0x1e2   : > { %v1178_v49 = vmax.f32 %v1170_v47, 0.0  ;;  %v2661_v47 = vld [vmem:[#allocation3 + $0x2f0] sm:$0xff] }
 0x1e3   : > { %1722 = vmatpush.bf16.msrb.mxu3 %v2661_v47  ;;  %v2666_v47 = vld [vmem:[#allocation3 + $0x318] sm:$0xff] }
 0x1e4   : > { %1186 = vst [vmem:[#allocation2 + $0x10] sm:$0xff] %v1178_v49 }
 0x1e5   : > { %v1040_v51 = vpop.f32.mrf.mxu3 }
 0x1e6   : > { %v1057_v52 = vadd.f32 %v1040_v51, %v935_v50 }
 0x1e8   : > { %v1171_v53 = vadd.f32 %v1154_v48, %v1057_v52  ;;  %v2652_v52 = vld [vmem:[#allocation3 + $0x2a8] sm:$0xff] }
 0x1e9   : > { %1639 = vmatpush.bf16.msra.mxu2 %v2652_v52  ;;  %v2665_v52 = vld [vmem:[#allocation3 + $0x310] sm:$0xff] }
 0x1ea   : > { %v1179_v54 = vmax.f32 %v1171_v53, 0.0  ;;  %v2644_v53 = vld [vmem:[#allocation3 + $0x268] sm:$0xff] }
 0x1eb   : > { %v1193_v1 = vld [vmem:[#allocation2 + $0x7] ss:$2 sm:$0xff]  ;;  %v1288_v3 = vld [vmem:[#allocation2 + $0x8] ss:$2 sm:$0xff]  ;;  %1554 = vmatpush.bf16.msra.mxu1 %v2644_v53 }
 0x1ec   : > { %1187 = vst [vmem:[#allocation2 + $0x18] sm:$0xff] %v1179_v54  ;;  %v1382_v4 = vld [vmem:[#allocation2 + $0x9] ss:$2 sm:$0xff]  ;;  %v2674_v53 = vld [vmem:[#allocation3 + $0x358] sm:$0xff] }
 0x1ed   : > { %v1042_v57 = vpop.f32.mrf.mxu3  ;;  %v2660_v54 = vld [vmem:[#allocation3 + $0x2e8] sm:$0xff] }
 0x1ee   : > { %v1058_v26 = vadd.f32 %v1042_v57, %v936_v56  ;;  %1723 = vmatpush.bf16.msrb.mxu3 %v2660_v54  ;;  %v2682_v54 = vld [vmem:[#allocation3 + $0x398] sm:$0xff] }
 0x1f0   : > { %v1172_v58 = vadd.f32 %v1156_v55, %v1058_v26  ;;  %v2651_v26 = vld [vmem:[#allocation3 + $0x2a0] sm:$0xff] }
 0x1f1   : > { %1640 = vmatpush.bf16.msra.mxu2 %v2651_v26  ;;  %v2672_v26 = vld [vmem:[#allocation3 + $0x348] sm:$0xff] }
 0x1f2   : > { %v1180_v59 = vmax.f32 %v1172_v58, 0.0  ;;  %v2643_v58 = vld [vmem:[#allocation3 + $0x260] sm:$0xff] }
 0x1f3   : > { %1555 = vmatpush.bf16.msra.mxu1 %v2643_v58  ;;  %v2680_v58 = vld [vmem:[#allocation3 + $0x388] sm:$0xff] }
 0x1f4   : > { %1188 = vst [vmem:[#allocation2 + $0x20] sm:$0xff] %v1180_v59  ;;  %v2659_v59 = vld [vmem:[#allocation3 + $0x2e0] sm:$0xff] }
 0x1f5   : > { %v1045_v62 = vpop.f32.mrf.mxu3  ;;  %1724 = vmatpush.bf16.msrb.mxu3 %v2659_v59  ;;  %v2663_v59 = vld [vmem:[#allocation3 + $0x300] sm:$0xff] }
 0x1f6   : > { %v1059_v63 = vadd.f32 %v1045_v62, %v937_v61 }
 0x1f8   : > { %v1173_v0 = vadd.f32 %v1159_v60, %v1059_v63  ;;  %v2650_v63 = vld [vmem:[#allocation3 + $0x298] sm:$0xff] }
 0x1f9   : > { %1641 = vmatpush.bf16.msra.mxu2 %v2650_v63  ;;  %v1566_v63 = vperm.slane %v3026_v25, 3 }
 0x1fa   : > { %v1181_v2 = vmax.f32 %v1173_v0, 0.0  ;;  %v2642_v0 = vld [vmem:[#allocation3 + $0x258] sm:$0xff] }
 0x1fb   : > { %v1194_v5 = vld [vmem:[#allocation2 + $0x17] ss:$2 sm:$0xff]  ;;  %v1289_v6 = vld [vmem:[#allocation2 + $0x18] ss:$2 sm:$0xff]  ;;  %1556 = vmatpush.bf16.msra.mxu1 %v2642_v0 }
 0x1fc   : > { %v1383_v7 = vld [vmem:[#allocation2 + $0x19] ss:$2 sm:$0xff]  ;;  %1189 = vst [vmem:[#allocation2 + $0x28] sm:$0xff] %v1181_v2  ;;  %v1197_v9 = vpack.c.bf16 %v1194_v5, %v1193_v1  ;;  %v1292_v10 = vpack.c.bf16 %v1289_v6, %v1288_v3 }
 0x1fd   : > { %v1386_v11 = vpack.c.bf16 %v1383_v7, %v1382_v4  ;;  %v1047_v13 = vpop.f32.mrf.mxu3  ;;  %v2658_v1 = vld [vmem:[#allocation3 + $0x2d8] sm:$0xff]  ;;  %v2649_v5 = vld [vmem:[#allocation3 + $0x290] sm:$0xff] }
 0x1fe   : > { %v1060_v14 = vadd.f32 %v1047_v13, %v938_v8  ;;  %1272 = vmatmul.bf16.vlgmr.msrb.gmra.mxu1 %v1197_v9  ;;  %1367 = vmatmul.bf16.vlgmr.msrb.gmra.mxu2 %v1292_v10  ;;  %v2641_v6 = vld [vmem:[#allocation3 + $0x250] sm:$0xff]  ;;  %v2648_v8 = vld [vmem:[#allocation3 + $0x288] sm:$0xff]  ;;  %v2655_v13 = vld [vmem:[#allocation3 + $0x2c0] sm:$0xff] }
 0x1ff   : > { %1461 = vmatmul.bf16.vlgmr.msra.gmra.mxu3 %v1386_v11  ;;  %v2657_v7 = vld [vmem:[#allocation3 + $0x2d0] sm:$0xff]  ;;  %1642 = vmatpush.bf16.msra.mxu2 %v2649_v5  ;;  %v2640_v9 = vld [vmem:[#allocation3 + $0x248] sm:$0xff]  ;;  %v2647_v11 = vld [vmem:[#allocation3 + $0x280] sm:$0xff] }
 0x200   : > { %v1174_v15 = vadd.f32 %v1161_v12, %v1060_v14  ;;  %1725 = vmatpush.bf16.msrb.mxu3 %v2658_v1  ;;  %1557 = vmatpush.bf16.msra.mxu1 %v2641_v6  ;;  %v2656_v10 = vld [vmem:[#allocation3 + $0x2c8] sm:$0xff]  ;;  %v2639_v12 = vld [vmem:[#allocation3 + $0x240] sm:$0xff] }
 0x202   : > { %v1182_v16 = vmax.f32 %v1174_v15, 0.0  ;;  %v2670_v15 = vld [vmem:[#allocation3 + $0x338] sm:$0xff] }
 0x203   : > { %1643 = vmatpush.bf16.msra.mxu2 %v2648_v8  ;;  %1808 = vmatpush.bf16.msra.mxu0 %v2670_v15 }
 0x204   : > { %1190 = vst [vmem:[#allocation2 + $0x30] sm:$0xff] %v1182_v16  ;;  %1726 = vmatpush.bf16.msrb.mxu3 %v2657_v7  ;;  %1558 = vmatpush.bf16.msra.mxu1 %v2640_v9  ;;  %v2669_v16 = vld [vmem:[#allocation3 + $0x330] sm:$0xff] }
 0x205   : > { %v1050_v20 = vpop.f32.mrf.mxu3 }
 0x206   : > { %v1061_v21 = vadd.f32 %v1050_v20, %v939_v17  ;;  %v2668_v20 = vld [vmem:[#allocation3 + $0x328] sm:$0xff] }
 0x207   : > { %1644 = vmatpush.bf16.msra.mxu2 %v2647_v11  ;;  %1809 = vmatpush.bf16.msra.mxu0 %v2669_v16 }
 0x208   : > { %v1175_v19 = vadd.f32 %v1164_v18, %v1061_v21  ;;  %1727 = vmatpush.bf16.msrb.mxu3 %v2656_v10  ;;  %1559 = vmatpush.bf16.msra.mxu1 %v2639_v12 }
 0x20a   : > { %v1183_v22 = vmax.f32 %v1175_v19, 0.0 }
 0x20b   : > { %v1195_v34 = vld [vmem:[#allocation2 + $0x27] ss:$2 sm:$0xff]  ;;  %v1290_v35 = vld [vmem:[#allocation2 + $0x28] ss:$2 sm:$0xff]  ;;  %1810 = vmatpush.bf16.msra.mxu0 %v2668_v20 }
 0x20c   : > { %1191 = vst [vmem:[#allocation2 + $0x38] sm:$0xff] %v1183_v22  ;;  %v1384_v36 = vld [vmem:[#allocation2 + $0x29] ss:$2 sm:$0xff]  ;;  %1728 = vmatpush.bf16.msrb.mxu3 %v2655_v13 }
 0x20d   : > { %v1052_v28 = vpop.f32.mrf.mxu3 }
 0x20e   : > { %v1062_v29 = vadd.f32 %v1052_v28, %v940_v24  ;;  %v2667_v28 = vld [vmem:[#allocation3 + $0x320] sm:$0xff] }
 0x20f   : > { %1811 = vmatpush.bf16.msra.mxu0 %v2667_v28 }
 0x210   : > { %v1176_v32 = vadd.f32 %v1166_v31, %v1062_v29 }
 0x212   : > { %v1184_v33 = vmax.f32 %v1176_v32, 0.0 }
 0x213   : > { %1812 = vmatpush.bf16.msra.mxu0 %v2666_v47 }
 0x214   : > { %1192 = vst [vmem:[#allocation2 + $0x40] sm:$0xff] %v1184_v33 }
 0x217   : > { %1813 = vmatpush.bf16.msra.mxu0 %v2665_v52 }
 0x21b   : > { %v1196_v23 = vld [vmem:[#allocation2 + $0x37] ss:$2 sm:$0xff]  ;;  %v1291_v37 = vld [vmem:[#allocation2 + $0x38] ss:$2 sm:$0xff] }
 0x21c   : > { %v1385_v38 = vld [vmem:[#allocation2 + $0x39] ss:$2 sm:$0xff]  ;;  %v1198_v39 = vpack.c.bf16 %v1196_v23, %v1195_v34  ;;  %v1293_v40 = vpack.c.bf16 %v1291_v37, %v1290_v35 }
 0x21d   : > { %v1387_v41 = vpack.c.bf16 %v1385_v38, %v1384_v36 }
 0x21e   : > { %1277 = vmatmul.bf16.gmra.mxu1 %v1198_v39  ;;  %1372 = vmatmul.bf16.gmra.mxu2 %v1293_v40 }
 0x21f   : > { %1466 = vmatmul.bf16.gmra.mxu3 %v1387_v41 }
 0x27b   : > { %v1273_v43 = vpop.f32.mrf.mxu1 }
 0x27c   : > { %v1284_v48 = vadd.f32 %v3068_v44, %v1273_v43  ;;  %v2678_v43 = vld [vmem:[#allocation3 + $0x378] sm:$0xff] }
 0x27d   : > { %1890 = vmatpush.bf16.msrb.mxu1 %v2678_v43 }
 0x281   : > { %v1368_v49 = vpop.f32.mrf.mxu2  ;;  %1891 = vmatpush.bf16.msrb.mxu1 %v2677_v45 }
 0x282   : > { %v1378_v50 = vadd.f32 %v1368_v49, %v1284_v48  ;;  %v1462_v51 = vpop.f32.mrf.mxu3  ;;  %v2676_v48 = vld [vmem:[#allocation3 + $0x368] sm:$0xff] }
 0x283   : > { %v1275_v56 = vpop.f32.mrf.mxu1  ;;  %v2684_v49 = vld [vmem:[#allocation3 + $0x3a8] sm:$0xff] }
 0x284   : > { %v1472_v55 = vadd.f32 %v1462_v51, %v1378_v50  ;;  %v1285_v60 = vadd.f32 %v3068_v44, %v1275_v56  ;;  %v2675_v50 = vld [vmem:[#allocation3 + $0x360] sm:$0xff]  ;;  %v2681_v56 = vld [vmem:[#allocation3 + $0x390] sm:$0xff] }
 0x285   : > { %1892 = vmatpush.bf16.msrb.mxu1 %v2676_v48  ;;  %v2683_v51 = vld [vmem:[#allocation3 + $0x3a0] sm:$0xff] }
 0x286   : > { %v1476_v57 = vmax.f32 %v1472_v55, 0.0  ;;  %v2673_v55 = vld [vmem:[#allocation3 + $0x350] sm:$0xff] }
 0x288   : > { %1480 = vst [vmem:[#allocation2 + $0x8] sm:$0xff] %v1476_v57  ;;  %v2664_v57 = vld [vmem:[#allocation3 + $0x308] sm:$0xff] }
 0x289   : > { %v1370_v61 = vpop.f32.mrf.mxu2  ;;  %1893 = vmatpush.bf16.msrb.mxu1 %v2675_v50  ;;  %1814 = vmatpush.bf16.msra.mxu0 %v2664_v57 }
 0x28a   : > { %v1379_v62 = vadd.f32 %v1370_v61, %v1285_v60  ;;  %v1464_v2 = vpop.f32.mrf.mxu3  ;;  %v2671_v60 = vld [vmem:[#allocation3 + $0x340] sm:$0xff] }
 0x28b   : > { %v2679_v61 = vld [vmem:[#allocation3 + $0x380] sm:$0xff] }
 0x28c   : > { %v1473_v3 = vadd.f32 %v1464_v2, %v1379_v62 }
 0x28d   : > { %1894 = vmatpush.bf16.msrb.mxu1 %v2674_v53  ;;  %1815 = vmatpush.bf16.msra.mxu0 %v2663_v59 }
 0x28e   : > { %v1477_v4 = vmax.f32 %v1473_v3, 0.0 }
 0x290   : > { %1481 = vst [vmem:[#allocation2 + $0x10] sm:$0xff] %v1477_v4 }
 0x291   : > { %1895 = vmatpush.bf16.msrb.mxu1 %v2673_v55 }
 0x295   : > { %1896 = vmatpush.bf16.msrb.mxu1 %v2672_v26 }
 0x297   : > { %v1484_v23 = vld [vmem:[#allocation2 + $0x7] ss:$2 sm:$0xff]  ;;  %v1569_v37 = vld [vmem:[#allocation2 + $0x8] ss:$2 sm:$0xff] }
 0x298   : > { %v1653_v38 = vld [vmem:[#allocation2 + $0x9] ss:$2 sm:$0xff] }
 0x299   : > { %1897 = vmatpush.bf16.msrb.mxu1 %v2671_v60 }
 0x29b   : > { %v1278_v14 = vpop.f32.mrf.mxu1 }
 0x29c   : > { %v1286_v17 = vadd.f32 %v3068_v44, %v1278_v14 }
 0x2a1   : > { %v1373_v18 = vpop.f32.mrf.mxu2 }
 0x2a2   : > { %v1380_v21 = vadd.f32 %v1373_v18, %v1286_v17  ;;  %v1467_v19 = vpop.f32.mrf.mxu3  ;;  %v2819_v18 = vld [vmem:[%s3112_s2] sm:$0x1f] }
 0x2a3   : > { %v1280_v24 = vpop.f32.mrf.mxu1  ;;  %v1821_v20 = vperm.slane %v2819_v18, 4 }
 0x2a4   : > { %v1474_v22 = vadd.f32 %v1467_v19, %v1380_v21  ;;  %v1287_v31 = vadd.f32 %v3068_v44, %v1280_v24  ;;  %v2686_v44 = vld [vmem:[#allocation3 + $0x3b8] sm:$0xff] }
 0x2a5   : > { %1971 = vmatpush.bf16.msrb.mxu2 %v2686_v44 }
 0x2a6   : > { %v1478_v29 = vmax.f32 %v1474_v22, 0.0 }
 0x2a8   : > { %1482 = vst [vmem:[#allocation2 + $0x18] sm:$0xff] %v1478_v29 }
 0x2a9   : > { %v1375_v32 = vpop.f32.mrf.mxu2  ;;  %1972 = vmatpush.bf16.msrb.mxu2 %v2685_v46 }
 0x2aa   : > { %v1381_v33 = vadd.f32 %v1375_v32, %v1287_v31  ;;  %v1469_v34 = vpop.f32.mrf.mxu3 }
 0x2ac   : > { %v1475_v35 = vadd.f32 %v1469_v34, %v1381_v33 }
 0x2ad   : > { %1973 = vmatpush.bf16.msrb.mxu2 %v2684_v49 }
 0x2ae   : > { %v1479_v36 = vmax.f32 %v1475_v35, 0.0 }
 0x2b0   : > { %1483 = vst [vmem:[#allocation2 + $0x20] sm:$0xff] %v1479_v36 }
 0x2b1   : > { %1974 = vmatpush.bf16.msrb.mxu2 %v2683_v51 }
 0x2b5   : > { %1975 = vmatpush.bf16.msrb.mxu2 %v2682_v54 }
 0x2b7   : > { %v1485_v39 = vld [vmem:[#allocation2 + $0x17] ss:$2 sm:$0xff]  ;;  %v1570_v40 = vld [vmem:[#allocation2 + $0x18] ss:$2 sm:$0xff] }
 0x2b8   : > { %v1654_v41 = vld [vmem:[#allocation2 + $0x19] ss:$2 sm:$0xff]  ;;  %v1486_v27 = vpack.c.bf16 %v1485_v39, %v1484_v23  ;;  %v1571_v30 = vpack.c.bf16 %v1570_v40, %v1569_v37 }
 0x2b9   : > { %v1655_v42 = vpack.c.bf16 %v1654_v41, %v1653_v38  ;;  %1976 = vmatpush.bf16.msrb.mxu2 %v2681_v56 }
 0x2ba   : > { %1560 = vmatmul.bf16.vlgmr.msra.gmra.mxu1 %v1486_v27  ;;  %1645 = vmatmul.bf16.vlgmr.msra.gmra.mxu2 %v1571_v30 }
 0x2bb   : > { %1729 = vmatmul.bf16.vlgmr.msrb.gmra.mxu3 %v1655_v42 }
 0x2bd   : > { %1977 = vmatpush.bf16.msrb.mxu2 %v2680_v58 }
 0x2c1   : > { %1978 = vmatpush.bf16.msrb.mxu2 %v2679_v61 }
 0x337   : > { %v1561_v62 = vpop.f32.mrf.mxu1 }
 0x338   : > { %v1567_v0 = vadd.f32 %v1566_v63, %v1561_v62 }
 0x33d   : > { %v1646_v1 = vpop.f32.mrf.mxu2 }
 0x33e   : > { %v1651_v2 = vadd.f32 %v1646_v1, %v1567_v0  ;;  %v1730_v3 = vpop.f32.mrf.mxu3 }
 0x33f   : > { %v1563_v5 = vpop.f32.mrf.mxu1 }
 0x340   : > { %v1735_v4 = vadd.f32 %v1730_v3, %v1651_v2  ;;  %v1568_v7 = vadd.f32 %v1566_v63, %v1563_v5 }
 0x342   : > { %v1737_v6 = vmax.f32 %v1735_v4, 0.0 }
 0x344   : > { %1739 = vst [vmem:[#allocation2 + $0x8] sm:$0xff] %v1737_v6 }
 0x345   : > { %v1648_v8 = vpop.f32.mrf.mxu2 }
 0x346   : > { %v1652_v9 = vadd.f32 %v1648_v8, %v1568_v7  ;;  %v1732_v10 = vpop.f32.mrf.mxu3 }
 0x348   : > { %v1736_v11 = vadd.f32 %v1732_v10, %v1652_v9 }
 0x34a   : > { %v1738_v12 = vmax.f32 %v1736_v11, 0.0 }
 0x34c   : > { %1740 = vst [vmem:[#allocation2 + $0x10] sm:$0xff] %v1738_v12 }
 0x353   : > { %v1741_v13 = vld [vmem:[#allocation2 + $0x7] ss:$2 sm:$0xff]  ;;  %v1823_v14 = vld [vmem:[#allocation2 + $0x8] ss:$2 sm:$0xff] }
 0x354   : > { %v1904_v25 = vld [vmem:[#allocation2 + $0x9] ss:$2 sm:$0xff]  ;;  %v1742_v15 = vpack.c.bf16 %v1741_v13, %v1741_v13  ;;  %v1824_v16 = vpack.c.bf16 %v1823_v14, %v1823_v14 }
 0x355   : > { %v1905_v17 = vpack.c.bf16 %v1904_v25, %v1904_v25 }
 0x356   : > { %1816 = vmatmul.bf16.vlgmr.msra.gmra.mxu0 %v1742_v15  ;;  %1898 = vmatmul.bf16.vlgmr.msrb.gmra.mxu1 %v1824_v16 }
 0x357   : > { %1979 = vmatmul.bf16.vlgmr.msrb.gmra.mxu2 %v1905_v17 }
 0x3d3   : > { %v1817_v21 = vpop.f32.mrf.mxu0  ;;  %v1899_v19 = vpop.f32.mrf.mxu1 }
 0x3d4   : > { %v1822_v22 = vadd.f32 %v1821_v20, %v1817_v21 }
 0x3d6   : > { %v1903_v24 = vadd.f32 %v1899_v19, %v1822_v22 }
 0x3da   : > { %v1980_v28 = vpop.f32.mrf.mxu2 }
 0x3db   : > { %v1984_v29 = vadd.f32 %v1980_v28, %v1903_v24  ;;  %v1819_v31 = vpop.f32.mrf.mxu0  ;;  %v1901_v32 = vpop.f32.mrf.mxu1 }
 0x3dd   : > { %1985 = vst [vmem:[%s180_s28] sm:$0xff] %v1984_v29 }
 0x3de   : > { %2877 = shalt.err (!%p2874_p8)
}
 0x3df   : > { %2770 = dma.vmem_to_hbm [thread:$0]  (%p2980_p5), %s2000_s29, 128, %s2002_s30, %s1987_s16  }
 0x3e2   : > { %v1982_v33 = vpop.f32.mrf.mxu2 }
 0x3e3 PF: > { %p2782_p9 = scmp.ge.s32.totalorder %s2916_s15, 2  ;;  %s2013_s11 = sand.u32 1, %s2904_s12  }
 0x3e4   : > { %s2014_s17 = scalar_lea.sflag [#allocation5], %s2013_s11 }
 0x3e5   : > { %p2777_p10 = pnand %p2782_p9, %p2984_p6 }
 0x3e7   : > { %p2778_p11 = pneg %p2777_p10 }
 0x3e9   : > { %2899 = dma.done.wait (%p2778_p11), %s2014_s17, 128  }
 0x3ea   : > { %2901 = vsyncadd (%p2778_p11), %s2014_s17, 4294967168  ;;  %p14_p12 = scmp.ge.s32.totalorder %s2967_s18, 4   ;;  %s3116_s12 = smov %s2908_s13 }
 0x3eb   : > { %s3117_s13 = smov %s2912_s14  ;;  %s3118_s14 = smov %s2978_s21 }
 0x3ec   : > { %s3119_s15 = smov %s2967_s18  ;;  %16 = sbr.rel (!%p14_p12) target bundleno = 4 (0x4), region = 142 }
 0x3f1   :  { %2020 = vsyncpa [#allocation4], 1 }
 0x3f2   :  { %2022 = vsyncpa [#allocation4 + $0x1], 1 }
 0x3f3   :  { %2023 = vsyncpa [#allocation5], 1 }
 0x3f4   :  { %2025 = vsyncpa [#allocation5 + $0x1], 1 }

</bundles_post_ra>
